<compile_context>
chip_gen: v5e
topology: v5e:2x2
jax: 0.10.0
libtpu: 0.0.40
codegen_flags: <defaults>
</compile_context>

<pallas_src>
import functools

import jax
import jax.numpy as jnp
from jax.experimental import pallas as pl
from jax.experimental.pallas import tpu as pltpu


def _inception_kernel(x_ref, w1_ref, s1_ref, b1_ref,
                      w3_ref, s3_ref, b3_ref,
                      w5_ref, s5_ref, b5_ref,
                      o_ref, *, H, W, cout, red):
    """Whole inception block for one image.

    Layout: channels on sublanes, flattened spatial (H*W) on lanes.
      x_ref : (1, Cin, H*W)         f32 input (one image)
      w1_ref: (2*cout+2*red, Cin)   bf16 fused 1x1 weights [b1 | b2a | b3a | b4]
      s1/b1 : (2*cout+2*red, 1)     f32 folded BN scale / bias (per out row)
      w3_ref: (cout, 9*red)         bf16 im2col'd 3x3 weights
      w5_ref: (cout, 25*red)        bf16 im2col'd 5x5 weights
      o_ref : (1, 4*cout, H*W)      f32 concat(branch1..4) output
    """
    HW = H * W
    xb = x_ref[0].astype(jnp.bfloat16)                         # (Cin, HW)

    # ---- all four 1x1 convs as ONE lane-dense MXU matmul + BN + ReLU ----
    z = jnp.dot(w1_ref[...], xb, preferred_element_type=jnp.float32)
    z = jnp.maximum(z * s1_ref[...] + b1_ref[...], 0.0)        # (C1tot, HW) f32

    y1 = z[0:cout]                                             # branch1 output
    a2 = z[cout:cout + red]                                    # branch2 bottleneck
    a3 = z[cout + red:cout + 2 * red]                          # branch3 bottleneck
    y4 = z[cout + 2 * red:2 * cout + 2 * red]                  # branch4 output

    def conv_kxk(a, w_ref, s_ref, b_ref, ksize):
        """KxK 'same' conv via im2col: one matmul of depth K*K*red."""
        pad = (ksize - 1) // 2
        m = pad * W + pad                       # max |flat shift|
        off = ((m + 127) // 128) * 128          # 128-lane-aligned zero margin
        zeros = jnp.zeros((a.shape[0], off), a.dtype)
        a_ext = jnp.concatenate([zeros, a, zeros], axis=1)     # (red, HW+2*off)
        wcoord = jax.lax.broadcasted_iota(jnp.int32, a.shape, 1) % W
        pieces = []
        for kh in range(ksize):
            for kw in range(ksize):
                dy, dx = kh - pad, kw - pad
                shift = dy * W + dx
                patch = a_ext[:, off + shift:off + shift + HW]
                # zero columns that wrapped across image-row boundaries
                valid = (wcoord + dx >= 0) & (wcoord + dx < W)
                pieces.append(jnp.where(valid, patch, 0.0))
        patches = jnp.concatenate(pieces, axis=0).astype(jnp.bfloat16)
        acc = jnp.dot(w_ref[...], patches,                     # (cout, HW)
                      preferred_element_type=jnp.float32)
        return jnp.maximum(acc * s_ref[...] + b_ref[...], 0.0)

    y2 = conv_kxk(a2, w3_ref, s3_ref, b3_ref, 3)
    y3 = conv_kxk(a3, w5_ref, s5_ref, b5_ref, 5)

    # channel-concat of the four branches -> lane-dense (4*cout, HW) store
    o_ref[0] = jnp.concatenate([y1, y2, y3, y4], axis=0).astype(o_ref.dtype)


def inception_block(x_nchw, w1, s1, b1, w3, s3, b3, w5, s5, b5, *, cout, red):
    N, Cin, H, W = x_nchw.shape
    HW = H * W
    x2 = x_nchw.reshape(N, Cin, HW).astype(jnp.float32)        # free reshape (NCHW kept)

    kernel = functools.partial(_inception_kernel, H=H, W=W, cout=cout, red=red)
    # TODO(synk): for production-sized H*W / channel counts, add a spatially
    # tiled grid (halo'd H tiles) so blocks fit v7x's 64 MiB VMEM and both of
    # its TensorCores get work even when N == 1.
    out = pl.pallas_call(
        kernel,
        out_shape=jax.ShapeDtypeStruct((N, 4 * cout, HW), jnp.float32),
        grid_spec=pltpu.PrefetchScalarGridSpec(
            num_scalar_prefetch=0,
            grid=(N,),
            in_specs=[
                pl.BlockSpec((1, Cin, HW), lambda n: (n, 0, 0)),
                pl.BlockSpec(w1.shape, lambda n: (0, 0)),
                pl.BlockSpec(s1.shape, lambda n: (0, 0)),
                pl.BlockSpec(b1.shape, lambda n: (0, 0)),
                pl.BlockSpec(w3.shape, lambda n: (0, 0)),
                pl.BlockSpec(s3.shape, lambda n: (0, 0)),
                pl.BlockSpec(b3.shape, lambda n: (0, 0)),
                pl.BlockSpec(w5.shape, lambda n: (0, 0)),
                pl.BlockSpec(s5.shape, lambda n: (0, 0)),
                pl.BlockSpec(b5.shape, lambda n: (0, 0)),
            ],
            out_specs=pl.BlockSpec((1, 4 * cout, HW), lambda n: (n, 0, 0)),
        ),
        compiler_params=pltpu.CompilerParams(
            dimension_semantics=("parallel",)),
    )(x2, w1, s1, b1, w3, s3, b3, w5, s5, b5)
    return out.reshape(N, 4 * cout, H, W)                      # free reshape -> NCHW


def _fold_bn(gamma, beta, mean, var, conv_bias, eps=1e-5):
    scale = gamma / jnp.sqrt(var + eps)
    bias = beta + (conv_bias - mean) * scale
    return scale, bias


def make_conv_params(key, k, cin, cout):
    """Deterministic synthetic parameters for one Conv2d + BatchNorm2d."""
    kw_, kb_, kg, kbt, km, kv = jax.random.split(key, 6)
    w = jax.random.normal(kw_, (k, k, cin, cout), jnp.float32) * 0.1
    cb = jax.random.normal(kb_, (cout,), jnp.float32) * 0.05
    gamma = 1.0 + 0.1 * jax.random.normal(kg, (cout,), jnp.float32)
    beta = 0.1 * jax.random.normal(kbt, (cout,), jnp.float32)
    mean = 0.05 * jax.random.normal(km, (cout,), jnp.float32)
    var = jnp.abs(jax.random.normal(kv, (cout,), jnp.float32)) * 0.1 + 1.0
    scale, bias = _fold_bn(gamma, beta, mean, var, cb)
    return w, scale, bias


class InceptionBlockV1:
    """JAX/Pallas re-implementation of Inception_Block_v1 (inference)."""

    def __init__(self, in_features, out_features, key):
        keys = jax.random.split(key, 6)
        red = out_features          # reduction width of the 1x1 bottlenecks
        self.cout, self.red = out_features, red

        b1 = make_conv_params(keys[0], 1, in_features, out_features)   # 1x1
        b2a = make_conv_params(keys[1], 1, in_features, red)           # 1x1
        b2b = make_conv_params(keys[2], 3, red, out_features)          # 3x3
        b3a = make_conv_params(keys[3], 1, in_features, red)           # 1x1
        b3b = make_conv_params(keys[4], 5, red, out_features)          # 5x5
        # TODO(synk): reference Sequential omits the usual MaxPool before the
        # branch-4 1x1 conv; implemented as plain 1x1 conv+BN+ReLU as written.
        b4 = make_conv_params(keys[5], 1, in_features, out_features)   # 1x1
        self._raw = (b1, b2a, b2b, b3a, b3b, b4)

        def rows_1x1(p):            # (1,1,Cin,Co) -> (Co, Cin)
            return jnp.transpose(p[0][0, 0], (1, 0))

        # Fused 1x1 weight / scale / bias, row order [b1 | b2a | b3a | b4].
        self.w1 = jnp.concatenate(
            [rows_1x1(b1), rows_1x1(b2a), rows_1x1(b3a), rows_1x1(b4)],
            axis=0).astype(jnp.bfloat16)
        self.s1 = jnp.concatenate([b1[1], b2a[1], b3a[1], b4[1]])[:, None]
        self.o1 = jnp.concatenate([b1[2], b2a[2], b3a[2], b4[2]])[:, None]

        def im2col_w(p):            # (K,K,Cin,Co) -> (Co, K*K*Cin)
            w = p[0]
            return jnp.transpose(w, (3, 0, 1, 2)).reshape(w.shape[3], -1)

        self.w3 = im2col_w(b2b).astype(jnp.bfloat16)
        self.s3, self.o3 = b2b[1][:, None], b2b[2][:, None]
        self.w5 = im2col_w(b3b).astype(jnp.bfloat16)
        self.s5, self.o5 = b3b[1][:, None], b3b[2][:, None]

    def __call__(self, x_nchw):
        return inception_block(
            x_nchw, self.w1, self.s1, self.o1,
            self.w3, self.s3, self.o3, self.w5, self.s5, self.o5,
            cout=self.cout, red=self.red)

    def reference(self, x_nchw):
        """Pure-JAX f32 reference (lax.conv) for numerical validation."""
        b1, b2a, b2b, b3a, b3b, b4 = self._raw

        def cbr(x, p):
            w, s, b = p
            y = jax.lax.conv_general_dilated(
                x, w, window_strides=(1, 1), padding="SAME",
                dimension_numbers=("NCHW", "HWIO", "NCHW"),
                precision=jax.lax.Precision.HIGHEST)
            return jnp.maximum(
                y * s[None, :, None, None] + b[None, :, None, None], 0.0)

        y1 = cbr(x_nchw, b1)
        y2 = cbr(cbr(x_nchw, b2a), b2b)
        y3 = cbr(cbr(x_nchw, b3a), b3b)
        y4 = cbr(x_nchw, b4)
        return jnp.concatenate([y1, y2, y3, y4], axis=1)


if __name__ == "__main__":
    N, C_IN, H, W = 2, 4, 16, 16
    C_OUT = 8

    key = jax.random.PRNGKey(0)
    k_x, k_p = jax.random.split(key)
    x = jax.random.normal(k_x, (N, C_IN, H, W), jnp.float32)

    block = InceptionBlockV1(C_IN, C_OUT, k_p)
    out = jax.jit(block.__call__)(x)
    out = jax.block_until_ready(out)

    assert out.shape == (N, 4 * C_OUT, H, W), out.shape
    assert bool(jnp.all(jnp.isfinite(out)))
    assert bool(jnp.all(out >= 0.0))          # ReLU output

    ref = block.reference(x)
    tol = 5e-2 + 5e-2 * jnp.abs(ref)          # bf16-matmul tolerance
    assert bool(jnp.all(jnp.abs(out - ref) <= tol)), float(
        jnp.max(jnp.abs(out - ref)))

    print("KERNEL_OK")
</pallas_src>

<mosaic_0001>
module attributes {stable_mosaic.version = 11 : i64} {
  func.func @_inception_kernel(%arg0: i32, %arg1: memref<1x4x256xf32, #tpu.memory_space<vmem>>, %arg2: memref<32x4xbf16, #tpu.memory_space<vmem>>, %arg3: memref<32x1xf32, #tpu.memory_space<vmem>>, %arg4: memref<32x1xf32, #tpu.memory_space<vmem>>, %arg5: memref<8x72xbf16, #tpu.memory_space<vmem>>, %arg6: memref<8x1xf32, #tpu.memory_space<vmem>>, %arg7: memref<8x1xf32, #tpu.memory_space<vmem>>, %arg8: memref<8x200xbf16, #tpu.memory_space<vmem>>, %arg9: memref<8x1xf32, #tpu.memory_space<vmem>>, %arg10: memref<8x1xf32, #tpu.memory_space<vmem>>, %arg11: memref<1x32x256xf32, #tpu.memory_space<vmem>>) attributes {dimension_semantics = [#tpu.dimension_semantics<parallel>], iteration_bounds = array<i64: 2>, scalar_prefetch = 0 : i64, scratch_operands = 0 : i64, tpu.core_type = #tpu.core_type<tc>, window_params = [{transform_indices = @transform_0, window_bounds = array<i64: 1, 4, 256>}, {pipeline_mode = #tpu.pipeline_mode<synchronous>, transform_indices = @transform_1, window_bounds = array<i64: 32, 4>}, {pipeline_mode = #tpu.pipeline_mode<synchronous>, transform_indices = @transform_2, window_bounds = array<i64: 32, 1>}, {pipeline_mode = #tpu.pipeline_mode<synchronous>, transform_indices = @transform_3, window_bounds = array<i64: 32, 1>}, {pipeline_mode = #tpu.pipeline_mode<synchronous>, transform_indices = @transform_4, window_bounds = array<i64: 8, 72>}, {pipeline_mode = #tpu.pipeline_mode<synchronous>, transform_indices = @transform_5, window_bounds = array<i64: 8, 1>}, {pipeline_mode = #tpu.pipeline_mode<synchronous>, transform_indices = @transform_6, window_bounds = array<i64: 8, 1>}, {pipeline_mode = #tpu.pipeline_mode<synchronous>, transform_indices = @transform_7, window_bounds = array<i64: 8, 200>}, {pipeline_mode = #tpu.pipeline_mode<synchronous>, transform_indices = @transform_8, window_bounds = array<i64: 8, 1>}, {pipeline_mode = #tpu.pipeline_mode<synchronous>, transform_indices = @transform_9, window_bounds = array<i64: 8, 1>}, {transform_indices = @transform_10, window_bounds = array<i64: 1, 32, 256>}]} {
    %c0 = arith.constant 0 : index
    %c0_0 = arith.constant 0 : index
    %c0_1 = arith.constant 0 : index
    %0 = vector.load %arg1[%c0, %c0_0, %c0_1] : memref<1x4x256xf32, #tpu.memory_space<vmem>>, vector<1x4x256xf32>
    %1 = vector.shape_cast %0 : vector<1x4x256xf32> to vector<4x256xf32>
    %2 = arith.truncf %1 : vector<4x256xf32> to vector<4x256xbf16>
    %c0_2 = arith.constant 0 : index
    %c0_3 = arith.constant 0 : index
    %3 = vector.load %arg2[%c0_2, %c0_3] : memref<32x4xbf16, #tpu.memory_space<vmem>>, vector<32x4xbf16>
    %cst = arith.constant dense<0.000000e+00> : vector<32x256xf32>
    %4 = tpu.matmul %3, %2, %cst {dimension_numbers = #tpu.dot_dimension_numbers<[1], [0], [0], [1], [0, 0, 1, 1], [], []>} : vector<32x4xbf16>, vector<4x256xbf16>, vector<32x256xf32> -> vector<32x256xf32>
    %c0_4 = arith.constant 0 : index
    %c0_5 = arith.constant 0 : index
    %5 = vector.load %arg3[%c0_4, %c0_5] : memref<32x1xf32, #tpu.memory_space<vmem>>, vector<32x1xf32>
    %6 = vector.broadcast %5 : vector<32x1xf32> to vector<32x256xf32>
    %7 = arith.mulf %4, %6 : vector<32x256xf32>
    %c0_6 = arith.constant 0 : index
    %c0_7 = arith.constant 0 : index
    %8 = vector.load %arg4[%c0_6, %c0_7] : memref<32x1xf32, #tpu.memory_space<vmem>>, vector<32x1xf32>
    %9 = vector.broadcast %8 : vector<32x1xf32> to vector<32x256xf32>
    %10 = arith.addf %7, %9 : vector<32x256xf32>
    %cst_8 = arith.constant 0.000000e+00 : f32
    %11 = vector.broadcast %cst_8 : f32 to vector<32x256xf32>
    %12 = arith.maximumf %10, %11 : vector<32x256xf32>
    %13 = vector.extract_strided_slice %12 {offsets = [0, 0], sizes = [8, 256], strides = [1, 1]} : vector<32x256xf32> to vector<8x256xf32>
    %14 = vector.extract_strided_slice %12 {offsets = [8, 0], sizes = [8, 256], strides = [1, 1]} : vector<32x256xf32> to vector<8x256xf32>
    %15 = vector.extract_strided_slice %12 {offsets = [16, 0], sizes = [8, 256], strides = [1, 1]} : vector<32x256xf32> to vector<8x256xf32>
    %16 = vector.extract_strided_slice %12 {offsets = [24, 0], sizes = [8, 256], strides = [1, 1]} : vector<32x256xf32> to vector<8x256xf32>
    %cst_9 = arith.constant 0.000000e+00 : f32
    %17 = vector.broadcast %cst_9 : f32 to vector<8x128xf32>
    %18 = tpu.concatenate %17, %14, %17 in 1 : vector<8x128xf32>, vector<8x256xf32>, vector<8x128xf32> -> vector<8x512xf32>
    %19 = tpu.iota {dimensions = array<i32: 1>} : vector<8x256xi32>
    %c16_i32 = arith.constant 16 : i32
    %c0_i32 = arith.constant 0 : i32
    %20 = arith.cmpi eq, %c16_i32, %c0_i32 : i32
    %c1_i32 = arith.constant 1 : i32
    %21 = arith.select %20, %c1_i32, %c16_i32 : i32
    %22 = vector.broadcast %21 : i32 to vector<8x256xi32>
    %23 = arith.remsi %19, %22 : vector<8x256xi32>
    %c0_i32_10 = arith.constant 0 : i32
    %24 = vector.broadcast %c0_i32_10 : i32 to vector<8x256xi32>
    %25 = arith.cmpi ne, %23, %24 : vector<8x256xi32>
    %c0_i32_11 = arith.constant 0 : i32
    %26 = vector.broadcast %c0_i32_11 : i32 to vector<8x256xi32>
    %27 = arith.cmpi slt, %23, %26 : vector<8x256xi32>
    %c0_i32_12 = arith.constant 0 : i32
    %28 = arith.cmpi slt, %21, %c0_i32_12 : i32
    %29 = vector.broadcast %28 : i1 to vector<8x256xi1>
    %30 = vector.broadcast %29 : vector<8x256xi1> to vector<8x256xi1>
    %31 = arith.xori %27, %30 : vector<8x256xi1>
    %32 = arith.andi %31, %25 : vector<8x256xi1>
    %33 = vector.broadcast %21 : i32 to vector<8x256xi32>
    %34 = arith.addi %23, %33 : vector<8x256xi32>
    %35 = arith.select %32, %34, %23 : vector<8x256xi1>, vector<8x256xi32>
    %36 = vector.extract_strided_slice %18 {offsets = [0, 111], sizes = [8, 256], strides = [1, 1]} : vector<8x512xf32> to vector<8x256xf32>
    %c-1_i32 = arith.constant -1 : i32
    %37 = vector.broadcast %c-1_i32 : i32 to vector<8x256xi32>
    %38 = arith.addi %35, %37 : vector<8x256xi32>
    %c0_i32_13 = arith.constant 0 : i32
    %39 = vector.broadcast %c0_i32_13 : i32 to vector<8x256xi32>
    %40 = arith.cmpi sge, %38, %39 : vector<8x256xi32>
    %c-1_i32_14 = arith.constant -1 : i32
    %41 = vector.broadcast %c-1_i32_14 : i32 to vector<8x256xi32>
    %42 = arith.addi %35, %41 : vector<8x256xi32>
    %c16_i32_15 = arith.constant 16 : i32
    %43 = vector.broadcast %c16_i32_15 : i32 to vector<8x256xi32>
    %44 = arith.cmpi slt, %42, %43 : vector<8x256xi32>
    %45 = arith.andi %40, %44 : vector<8x256xi1>
    %cst_16 = arith.constant 0.000000e+00 : f32
    %46 = vector.broadcast %cst_16 : f32 to vector<8x256xf32>
    %47 = arith.select %45, %36, %46 : vector<8x256xi1>, vector<8x256xf32>
    %48 = vector.extract_strided_slice %18 {offsets = [0, 112], sizes = [8, 256], strides = [1, 1]} : vector<8x512xf32> to vector<8x256xf32>
    %c0_i32_17 = arith.constant 0 : i32
    %49 = vector.broadcast %c0_i32_17 : i32 to vector<8x256xi32>
    %50 = arith.addi %35, %49 : vector<8x256xi32>
    %c0_i32_18 = arith.constant 0 : i32
    %51 = vector.broadcast %c0_i32_18 : i32 to vector<8x256xi32>
    %52 = arith.cmpi sge, %50, %51 : vector<8x256xi32>
    %c0_i32_19 = arith.constant 0 : i32
    %53 = vector.broadcast %c0_i32_19 : i32 to vector<8x256xi32>
    %54 = arith.addi %35, %53 : vector<8x256xi32>
    %c16_i32_20 = arith.constant 16 : i32
    %55 = vector.broadcast %c16_i32_20 : i32 to vector<8x256xi32>
    %56 = arith.cmpi slt, %54, %55 : vector<8x256xi32>
    %57 = arith.andi %52, %56 : vector<8x256xi1>
    %cst_21 = arith.constant 0.000000e+00 : f32
    %58 = vector.broadcast %cst_21 : f32 to vector<8x256xf32>
    %59 = arith.select %57, %48, %58 : vector<8x256xi1>, vector<8x256xf32>
    %60 = vector.extract_strided_slice %18 {offsets = [0, 113], sizes = [8, 256], strides = [1, 1]} : vector<8x512xf32> to vector<8x256xf32>
    %c1_i32_22 = arith.constant 1 : i32
    %61 = vector.broadcast %c1_i32_22 : i32 to vector<8x256xi32>
    %62 = arith.addi %35, %61 : vector<8x256xi32>
    %c0_i32_23 = arith.constant 0 : i32
    %63 = vector.broadcast %c0_i32_23 : i32 to vector<8x256xi32>
    %64 = arith.cmpi sge, %62, %63 : vector<8x256xi32>
    %c1_i32_24 = arith.constant 1 : i32
    %65 = vector.broadcast %c1_i32_24 : i32 to vector<8x256xi32>
    %66 = arith.addi %35, %65 : vector<8x256xi32>
    %c16_i32_25 = arith.constant 16 : i32
    %67 = vector.broadcast %c16_i32_25 : i32 to vector<8x256xi32>
    %68 = arith.cmpi slt, %66, %67 : vector<8x256xi32>
    %69 = arith.andi %64, %68 : vector<8x256xi1>
    %cst_26 = arith.constant 0.000000e+00 : f32
    %70 = vector.broadcast %cst_26 : f32 to vector<8x256xf32>
    %71 = arith.select %69, %60, %70 : vector<8x256xi1>, vector<8x256xf32>
    %72 = vector.extract_strided_slice %18 {offsets = [0, 127], sizes = [8, 256], strides = [1, 1]} : vector<8x512xf32> to vector<8x256xf32>
    %c-1_i32_27 = arith.constant -1 : i32
    %73 = vector.broadcast %c-1_i32_27 : i32 to vector<8x256xi32>
    %74 = arith.addi %35, %73 : vector<8x256xi32>
    %c0_i32_28 = arith.constant 0 : i32
    %75 = vector.broadcast %c0_i32_28 : i32 to vector<8x256xi32>
    %76 = arith.cmpi sge, %74, %75 : vector<8x256xi32>
    %c-1_i32_29 = arith.constant -1 : i32
    %77 = vector.broadcast %c-1_i32_29 : i32 to vector<8x256xi32>
    %78 = arith.addi %35, %77 : vector<8x256xi32>
    %c16_i32_30 = arith.constant 16 : i32
    %79 = vector.broadcast %c16_i32_30 : i32 to vector<8x256xi32>
    %80 = arith.cmpi slt, %78, %79 : vector<8x256xi32>
    %81 = arith.andi %76, %80 : vector<8x256xi1>
    %cst_31 = arith.constant 0.000000e+00 : f32
    %82 = vector.broadcast %cst_31 : f32 to vector<8x256xf32>
    %83 = arith.select %81, %72, %82 : vector<8x256xi1>, vector<8x256xf32>
    %84 = vector.extract_strided_slice %18 {offsets = [0, 128], sizes = [8, 256], strides = [1, 1]} : vector<8x512xf32> to vector<8x256xf32>
    %c0_i32_32 = arith.constant 0 : i32
    %85 = vector.broadcast %c0_i32_32 : i32 to vector<8x256xi32>
    %86 = arith.addi %35, %85 : vector<8x256xi32>
    %c0_i32_33 = arith.constant 0 : i32
    %87 = vector.broadcast %c0_i32_33 : i32 to vector<8x256xi32>
    %88 = arith.cmpi sge, %86, %87 : vector<8x256xi32>
    %c0_i32_34 = arith.constant 0 : i32
    %89 = vector.broadcast %c0_i32_34 : i32 to vector<8x256xi32>
    %90 = arith.addi %35, %89 : vector<8x256xi32>
    %c16_i32_35 = arith.constant 16 : i32
    %91 = vector.broadcast %c16_i32_35 : i32 to vector<8x256xi32>
    %92 = arith.cmpi slt, %90, %91 : vector<8x256xi32>
    %93 = arith.andi %88, %92 : vector<8x256xi1>
    %cst_36 = arith.constant 0.000000e+00 : f32
    %94 = vector.broadcast %cst_36 : f32 to vector<8x256xf32>
    %95 = arith.select %93, %84, %94 : vector<8x256xi1>, vector<8x256xf32>
    %96 = vector.extract_strided_slice %18 {offsets = [0, 129], sizes = [8, 256], strides = [1, 1]} : vector<8x512xf32> to vector<8x256xf32>
    %c1_i32_37 = arith.constant 1 : i32
    %97 = vector.broadcast %c1_i32_37 : i32 to vector<8x256xi32>
    %98 = arith.addi %35, %97 : vector<8x256xi32>
    %c0_i32_38 = arith.constant 0 : i32
    %99 = vector.broadcast %c0_i32_38 : i32 to vector<8x256xi32>
    %100 = arith.cmpi sge, %98, %99 : vector<8x256xi32>
    %c1_i32_39 = arith.constant 1 : i32
    %101 = vector.broadcast %c1_i32_39 : i32 to vector<8x256xi32>
    %102 = arith.addi %35, %101 : vector<8x256xi32>
    %c16_i32_40 = arith.constant 16 : i32
    %103 = vector.broadcast %c16_i32_40 : i32 to vector<8x256xi32>
    %104 = arith.cmpi slt, %102, %103 : vector<8x256xi32>
    %105 = arith.andi %100, %104 : vector<8x256xi1>
    %cst_41 = arith.constant 0.000000e+00 : f32
    %106 = vector.broadcast %cst_41 : f32 to vector<8x256xf32>
    %107 = arith.select %105, %96, %106 : vector<8x256xi1>, vector<8x256xf32>
    %108 = vector.extract_strided_slice %18 {offsets = [0, 143], sizes = [8, 256], strides = [1, 1]} : vector<8x512xf32> to vector<8x256xf32>
    %c-1_i32_42 = arith.constant -1 : i32
    %109 = vector.broadcast %c-1_i32_42 : i32 to vector<8x256xi32>
    %110 = arith.addi %35, %109 : vector<8x256xi32>
    %c0_i32_43 = arith.constant 0 : i32
    %111 = vector.broadcast %c0_i32_43 : i32 to vector<8x256xi32>
    %112 = arith.cmpi sge, %110, %111 : vector<8x256xi32>
    %c-1_i32_44 = arith.constant -1 : i32
    %113 = vector.broadcast %c-1_i32_44 : i32 to vector<8x256xi32>
    %114 = arith.addi %35, %113 : vector<8x256xi32>
    %c16_i32_45 = arith.constant 16 : i32
    %115 = vector.broadcast %c16_i32_45 : i32 to vector<8x256xi32>
    %116 = arith.cmpi slt, %114, %115 : vector<8x256xi32>
    %117 = arith.andi %112, %116 : vector<8x256xi1>
    %cst_46 = arith.constant 0.000000e+00 : f32
    %118 = vector.broadcast %cst_46 : f32 to vector<8x256xf32>
    %119 = arith.select %117, %108, %118 : vector<8x256xi1>, vector<8x256xf32>
    %120 = vector.extract_strided_slice %18 {offsets = [0, 144], sizes = [8, 256], strides = [1, 1]} : vector<8x512xf32> to vector<8x256xf32>
    %c0_i32_47 = arith.constant 0 : i32
    %121 = vector.broadcast %c0_i32_47 : i32 to vector<8x256xi32>
    %122 = arith.addi %35, %121 : vector<8x256xi32>
    %c0_i32_48 = arith.constant 0 : i32
    %123 = vector.broadcast %c0_i32_48 : i32 to vector<8x256xi32>
    %124 = arith.cmpi sge, %122, %123 : vector<8x256xi32>
    %c0_i32_49 = arith.constant 0 : i32
    %125 = vector.broadcast %c0_i32_49 : i32 to vector<8x256xi32>
    %126 = arith.addi %35, %125 : vector<8x256xi32>
    %c16_i32_50 = arith.constant 16 : i32
    %127 = vector.broadcast %c16_i32_50 : i32 to vector<8x256xi32>
    %128 = arith.cmpi slt, %126, %127 : vector<8x256xi32>
    %129 = arith.andi %124, %128 : vector<8x256xi1>
    %cst_51 = arith.constant 0.000000e+00 : f32
    %130 = vector.broadcast %cst_51 : f32 to vector<8x256xf32>
    %131 = arith.select %129, %120, %130 : vector<8x256xi1>, vector<8x256xf32>
    %132 = vector.extract_strided_slice %18 {offsets = [0, 145], sizes = [8, 256], strides = [1, 1]} : vector<8x512xf32> to vector<8x256xf32>
    %c1_i32_52 = arith.constant 1 : i32
    %133 = vector.broadcast %c1_i32_52 : i32 to vector<8x256xi32>
    %134 = arith.addi %35, %133 : vector<8x256xi32>
    %c0_i32_53 = arith.constant 0 : i32
    %135 = vector.broadcast %c0_i32_53 : i32 to vector<8x256xi32>
    %136 = arith.cmpi sge, %134, %135 : vector<8x256xi32>
    %c1_i32_54 = arith.constant 1 : i32
    %137 = vector.broadcast %c1_i32_54 : i32 to vector<8x256xi32>
    %138 = arith.addi %35, %137 : vector<8x256xi32>
    %c16_i32_55 = arith.constant 16 : i32
    %139 = vector.broadcast %c16_i32_55 : i32 to vector<8x256xi32>
    %140 = arith.cmpi slt, %138, %139 : vector<8x256xi32>
    %141 = arith.andi %136, %140 : vector<8x256xi1>
    %cst_56 = arith.constant 0.000000e+00 : f32
    %142 = vector.broadcast %cst_56 : f32 to vector<8x256xf32>
    %143 = arith.select %141, %132, %142 : vector<8x256xi1>, vector<8x256xf32>
    %144 = tpu.concatenate %47, %59, %71, %83, %95, %107, %119, %131, %143 in 0 : vector<8x256xf32>, vector<8x256xf32>, vector<8x256xf32>, vector<8x256xf32>, vector<8x256xf32>, vector<8x256xf32>, vector<8x256xf32>, vector<8x256xf32>, vector<8x256xf32> -> vector<72x256xf32>
    %145 = arith.truncf %144 : vector<72x256xf32> to vector<72x256xbf16>
    %c0_57 = arith.constant 0 : index
    %c0_58 = arith.constant 0 : index
    %146 = vector.load %arg5[%c0_57, %c0_58] : memref<8x72xbf16, #tpu.memory_space<vmem>>, vector<8x72xbf16>
    %cst_59 = arith.constant dense<0.000000e+00> : vector<8x256xf32>
    %147 = tpu.matmul %146, %145, %cst_59 {dimension_numbers = #tpu.dot_dimension_numbers<[1], [0], [0], [1], [0, 0, 1, 1], [], []>} : vector<8x72xbf16>, vector<72x256xbf16>, vector<8x256xf32> -> vector<8x256xf32>
    %c0_60 = arith.constant 0 : index
    %c0_61 = arith.constant 0 : index
    %148 = vector.load %arg6[%c0_60, %c0_61] : memref<8x1xf32, #tpu.memory_space<vmem>>, vector<8x1xf32>
    %149 = vector.broadcast %148 : vector<8x1xf32> to vector<8x256xf32>
    %150 = arith.mulf %147, %149 : vector<8x256xf32>
    %c0_62 = arith.constant 0 : index
    %c0_63 = arith.constant 0 : index
    %151 = vector.load %arg7[%c0_62, %c0_63] : memref<8x1xf32, #tpu.memory_space<vmem>>, vector<8x1xf32>
    %152 = vector.broadcast %151 : vector<8x1xf32> to vector<8x256xf32>
    %153 = arith.addf %150, %152 : vector<8x256xf32>
    %cst_64 = arith.constant 0.000000e+00 : f32
    %154 = vector.broadcast %cst_64 : f32 to vector<8x256xf32>
    %155 = arith.maximumf %153, %154 : vector<8x256xf32>
    %cst_65 = arith.constant 0.000000e+00 : f32
    %156 = vector.broadcast %cst_65 : f32 to vector<8x128xf32>
    %157 = tpu.concatenate %156, %15, %156 in 1 : vector<8x128xf32>, vector<8x256xf32>, vector<8x128xf32> -> vector<8x512xf32>
    %158 = tpu.iota {dimensions = array<i32: 1>} : vector<8x256xi32>
    %c16_i32_66 = arith.constant 16 : i32
    %c0_i32_67 = arith.constant 0 : i32
    %159 = arith.cmpi eq, %c16_i32_66, %c0_i32_67 : i32
    %c1_i32_68 = arith.constant 1 : i32
    %160 = arith.select %159, %c1_i32_68, %c16_i32_66 : i32
    %161 = vector.broadcast %160 : i32 to vector<8x256xi32>
    %162 = arith.remsi %158, %161 : vector<8x256xi32>
    %c0_i32_69 = arith.constant 0 : i32
    %163 = vector.broadcast %c0_i32_69 : i32 to vector<8x256xi32>
    %164 = arith.cmpi ne, %162, %163 : vector<8x256xi32>
    %c0_i32_70 = arith.constant 0 : i32
    %165 = vector.broadcast %c0_i32_70 : i32 to vector<8x256xi32>
    %166 = arith.cmpi slt, %162, %165 : vector<8x256xi32>
    %c0_i32_71 = arith.constant 0 : i32
    %167 = arith.cmpi slt, %160, %c0_i32_71 : i32
    %168 = vector.broadcast %167 : i1 to vector<8x256xi1>
    %169 = vector.broadcast %168 : vector<8x256xi1> to vector<8x256xi1>
    %170 = arith.xori %166, %169 : vector<8x256xi1>
    %171 = arith.andi %170, %164 : vector<8x256xi1>
    %172 = vector.broadcast %160 : i32 to vector<8x256xi32>
    %173 = arith.addi %162, %172 : vector<8x256xi32>
    %174 = arith.select %171, %173, %162 : vector<8x256xi1>, vector<8x256xi32>
    %175 = vector.extract_strided_slice %157 {offsets = [0, 94], sizes = [8, 256], strides = [1, 1]} : vector<8x512xf32> to vector<8x256xf32>
    %c-2_i32 = arith.constant -2 : i32
    %176 = vector.broadcast %c-2_i32 : i32 to vector<8x256xi32>
    %177 = arith.addi %174, %176 : vector<8x256xi32>
    %c0_i32_72 = arith.constant 0 : i32
    %178 = vector.broadcast %c0_i32_72 : i32 to vector<8x256xi32>
    %179 = arith.cmpi sge, %177, %178 : vector<8x256xi32>
    %c-2_i32_73 = arith.constant -2 : i32
    %180 = vector.broadcast %c-2_i32_73 : i32 to vector<8x256xi32>
    %181 = arith.addi %174, %180 : vector<8x256xi32>
    %c16_i32_74 = arith.constant 16 : i32
    %182 = vector.broadcast %c16_i32_74 : i32 to vector<8x256xi32>
    %183 = arith.cmpi slt, %181, %182 : vector<8x256xi32>
    %184 = arith.andi %179, %183 : vector<8x256xi1>
    %cst_75 = arith.constant 0.000000e+00 : f32
    %185 = vector.broadcast %cst_75 : f32 to vector<8x256xf32>
    %186 = arith.select %184, %175, %185 : vector<8x256xi1>, vector<8x256xf32>
    %187 = vector.extract_strided_slice %157 {offsets = [0, 95], sizes = [8, 256], strides = [1, 1]} : vector<8x512xf32> to vector<8x256xf32>
    %c-1_i32_76 = arith.constant -1 : i32
    %188 = vector.broadcast %c-1_i32_76 : i32 to vector<8x256xi32>
    %189 = arith.addi %174, %188 : vector<8x256xi32>
    %c0_i32_77 = arith.constant 0 : i32
    %190 = vector.broadcast %c0_i32_77 : i32 to vector<8x256xi32>
    %191 = arith.cmpi sge, %189, %190 : vector<8x256xi32>
    %c-1_i32_78 = arith.constant -1 : i32
    %192 = vector.broadcast %c-1_i32_78 : i32 to vector<8x256xi32>
    %193 = arith.addi %174, %192 : vector<8x256xi32>
    %c16_i32_79 = arith.constant 16 : i32
    %194 = vector.broadcast %c16_i32_79 : i32 to vector<8x256xi32>
    %195 = arith.cmpi slt, %193, %194 : vector<8x256xi32>
    %196 = arith.andi %191, %195 : vector<8x256xi1>
    %cst_80 = arith.constant 0.000000e+00 : f32
    %197 = vector.broadcast %cst_80 : f32 to vector<8x256xf32>
    %198 = arith.select %196, %187, %197 : vector<8x256xi1>, vector<8x256xf32>
    %199 = vector.extract_strided_slice %157 {offsets = [0, 96], sizes = [8, 256], strides = [1, 1]} : vector<8x512xf32> to vector<8x256xf32>
    %c0_i32_81 = arith.constant 0 : i32
    %200 = vector.broadcast %c0_i32_81 : i32 to vector<8x256xi32>
    %201 = arith.addi %174, %200 : vector<8x256xi32>
    %c0_i32_82 = arith.constant 0 : i32
    %202 = vector.broadcast %c0_i32_82 : i32 to vector<8x256xi32>
    %203 = arith.cmpi sge, %201, %202 : vector<8x256xi32>
    %c0_i32_83 = arith.constant 0 : i32
    %204 = vector.broadcast %c0_i32_83 : i32 to vector<8x256xi32>
    %205 = arith.addi %174, %204 : vector<8x256xi32>
    %c16_i32_84 = arith.constant 16 : i32
    %206 = vector.broadcast %c16_i32_84 : i32 to vector<8x256xi32>
    %207 = arith.cmpi slt, %205, %206 : vector<8x256xi32>
    %208 = arith.andi %203, %207 : vector<8x256xi1>
    %cst_85 = arith.constant 0.000000e+00 : f32
    %209 = vector.broadcast %cst_85 : f32 to vector<8x256xf32>
    %210 = arith.select %208, %199, %209 : vector<8x256xi1>, vector<8x256xf32>
    %211 = vector.extract_strided_slice %157 {offsets = [0, 97], sizes = [8, 256], strides = [1, 1]} : vector<8x512xf32> to vector<8x256xf32>
    %c1_i32_86 = arith.constant 1 : i32
    %212 = vector.broadcast %c1_i32_86 : i32 to vector<8x256xi32>
    %213 = arith.addi %174, %212 : vector<8x256xi32>
    %c0_i32_87 = arith.constant 0 : i32
    %214 = vector.broadcast %c0_i32_87 : i32 to vector<8x256xi32>
    %215 = arith.cmpi sge, %213, %214 : vector<8x256xi32>
    %c1_i32_88 = arith.constant 1 : i32
    %216 = vector.broadcast %c1_i32_88 : i32 to vector<8x256xi32>
    %217 = arith.addi %174, %216 : vector<8x256xi32>
    %c16_i32_89 = arith.constant 16 : i32
    %218 = vector.broadcast %c16_i32_89 : i32 to vector<8x256xi32>
    %219 = arith.cmpi slt, %217, %218 : vector<8x256xi32>
    %220 = arith.andi %215, %219 : vector<8x256xi1>
    %cst_90 = arith.constant 0.000000e+00 : f32
    %221 = vector.broadcast %cst_90 : f32 to vector<8x256xf32>
    %222 = arith.select %220, %211, %221 : vector<8x256xi1>, vector<8x256xf32>
    %223 = vector.extract_strided_slice %157 {offsets = [0, 98], sizes = [8, 256], strides = [1, 1]} : vector<8x512xf32> to vector<8x256xf32>
    %c2_i32 = arith.constant 2 : i32
    %224 = vector.broadcast %c2_i32 : i32 to vector<8x256xi32>
    %225 = arith.addi %174, %224 : vector<8x256xi32>
    %c0_i32_91 = arith.constant 0 : i32
    %226 = vector.broadcast %c0_i32_91 : i32 to vector<8x256xi32>
    %227 = arith.cmpi sge, %225, %226 : vector<8x256xi32>
    %c2_i32_92 = arith.constant 2 : i32
    %228 = vector.broadcast %c2_i32_92 : i32 to vector<8x256xi32>
    %229 = arith.addi %174, %228 : vector<8x256xi32>
    %c16_i32_93 = arith.constant 16 : i32
    %230 = vector.broadcast %c16_i32_93 : i32 to vector<8x256xi32>
    %231 = arith.cmpi slt, %229, %230 : vector<8x256xi32>
    %232 = arith.andi %227, %231 : vector<8x256xi1>
    %cst_94 = arith.constant 0.000000e+00 : f32
    %233 = vector.broadcast %cst_94 : f32 to vector<8x256xf32>
    %234 = arith.select %232, %223, %233 : vector<8x256xi1>, vector<8x256xf32>
    %235 = vector.extract_strided_slice %157 {offsets = [0, 110], sizes = [8, 256], strides = [1, 1]} : vector<8x512xf32> to vector<8x256xf32>
    %c-2_i32_95 = arith.constant -2 : i32
    %236 = vector.broadcast %c-2_i32_95 : i32 to vector<8x256xi32>
    %237 = arith.addi %174, %236 : vector<8x256xi32>
    %c0_i32_96 = arith.constant 0 : i32
    %238 = vector.broadcast %c0_i32_96 : i32 to vector<8x256xi32>
    %239 = arith.cmpi sge, %237, %238 : vector<8x256xi32>
    %c-2_i32_97 = arith.constant -2 : i32
    %240 = vector.broadcast %c-2_i32_97 : i32 to vector<8x256xi32>
    %241 = arith.addi %174, %240 : vector<8x256xi32>
    %c16_i32_98 = arith.constant 16 : i32
    %242 = vector.broadcast %c16_i32_98 : i32 to vector<8x256xi32>
    %243 = arith.cmpi slt, %241, %242 : vector<8x256xi32>
    %244 = arith.andi %239, %243 : vector<8x256xi1>
    %cst_99 = arith.constant 0.000000e+00 : f32
    %245 = vector.broadcast %cst_99 : f32 to vector<8x256xf32>
    %246 = arith.select %244, %235, %245 : vector<8x256xi1>, vector<8x256xf32>
    %247 = vector.extract_strided_slice %157 {offsets = [0, 111], sizes = [8, 256], strides = [1, 1]} : vector<8x512xf32> to vector<8x256xf32>
    %c-1_i32_100 = arith.constant -1 : i32
    %248 = vector.broadcast %c-1_i32_100 : i32 to vector<8x256xi32>
    %249 = arith.addi %174, %248 : vector<8x256xi32>
    %c0_i32_101 = arith.constant 0 : i32
    %250 = vector.broadcast %c0_i32_101 : i32 to vector<8x256xi32>
    %251 = arith.cmpi sge, %249, %250 : vector<8x256xi32>
    %c-1_i32_102 = arith.constant -1 : i32
    %252 = vector.broadcast %c-1_i32_102 : i32 to vector<8x256xi32>
    %253 = arith.addi %174, %252 : vector<8x256xi32>
    %c16_i32_103 = arith.constant 16 : i32
    %254 = vector.broadcast %c16_i32_103 : i32 to vector<8x256xi32>
    %255 = arith.cmpi slt, %253, %254 : vector<8x256xi32>
    %256 = arith.andi %251, %255 : vector<8x256xi1>
    %cst_104 = arith.constant 0.000000e+00 : f32
    %257 = vector.broadcast %cst_104 : f32 to vector<8x256xf32>
    %258 = arith.select %256, %247, %257 : vector<8x256xi1>, vector<8x256xf32>
    %259 = vector.extract_strided_slice %157 {offsets = [0, 112], sizes = [8, 256], strides = [1, 1]} : vector<8x512xf32> to vector<8x256xf32>
    %c0_i32_105 = arith.constant 0 : i32
    %260 = vector.broadcast %c0_i32_105 : i32 to vector<8x256xi32>
    %261 = arith.addi %174, %260 : vector<8x256xi32>
    %c0_i32_106 = arith.constant 0 : i32
    %262 = vector.broadcast %c0_i32_106 : i32 to vector<8x256xi32>
    %263 = arith.cmpi sge, %261, %262 : vector<8x256xi32>
    %c0_i32_107 = arith.constant 0 : i32
    %264 = vector.broadcast %c0_i32_107 : i32 to vector<8x256xi32>
    %265 = arith.addi %174, %264 : vector<8x256xi32>
    %c16_i32_108 = arith.constant 16 : i32
    %266 = vector.broadcast %c16_i32_108 : i32 to vector<8x256xi32>
    %267 = arith.cmpi slt, %265, %266 : vector<8x256xi32>
    %268 = arith.andi %263, %267 : vector<8x256xi1>
    %cst_109 = arith.constant 0.000000e+00 : f32
    %269 = vector.broadcast %cst_109 : f32 to vector<8x256xf32>
    %270 = arith.select %268, %259, %269 : vector<8x256xi1>, vector<8x256xf32>
    %271 = vector.extract_strided_slice %157 {offsets = [0, 113], sizes = [8, 256], strides = [1, 1]} : vector<8x512xf32> to vector<8x256xf32>
    %c1_i32_110 = arith.constant 1 : i32
    %272 = vector.broadcast %c1_i32_110 : i32 to vector<8x256xi32>
    %273 = arith.addi %174, %272 : vector<8x256xi32>
    %c0_i32_111 = arith.constant 0 : i32
    %274 = vector.broadcast %c0_i32_111 : i32 to vector<8x256xi32>
    %275 = arith.cmpi sge, %273, %274 : vector<8x256xi32>
    %c1_i32_112 = arith.constant 1 : i32
    %276 = vector.broadcast %c1_i32_112 : i32 to vector<8x256xi32>
    %277 = arith.addi %174, %276 : vector<8x256xi32>
    %c16_i32_113 = arith.constant 16 : i32
    %278 = vector.broadcast %c16_i32_113 : i32 to vector<8x256xi32>
    %279 = arith.cmpi slt, %277, %278 : vector<8x256xi32>
    %280 = arith.andi %275, %279 : vector<8x256xi1>
    %cst_114 = arith.constant 0.000000e+00 : f32
    %281 = vector.broadcast %cst_114 : f32 to vector<8x256xf32>
    %282 = arith.select %280, %271, %281 : vector<8x256xi1>, vector<8x256xf32>
    %283 = vector.extract_strided_slice %157 {offsets = [0, 114], sizes = [8, 256], strides = [1, 1]} : vector<8x512xf32> to vector<8x256xf32>
    %c2_i32_115 = arith.constant 2 : i32
    %284 = vector.broadcast %c2_i32_115 : i32 to vector<8x256xi32>
    %285 = arith.addi %174, %284 : vector<8x256xi32>
    %c0_i32_116 = arith.constant 0 : i32
    %286 = vector.broadcast %c0_i32_116 : i32 to vector<8x256xi32>
    %287 = arith.cmpi sge, %285, %286 : vector<8x256xi32>
    %c2_i32_117 = arith.constant 2 : i32
    %288 = vector.broadcast %c2_i32_117 : i32 to vector<8x256xi32>
    %289 = arith.addi %174, %288 : vector<8x256xi32>
    %c16_i32_118 = arith.constant 16 : i32
    %290 = vector.broadcast %c16_i32_118 : i32 to vector<8x256xi32>
    %291 = arith.cmpi slt, %289, %290 : vector<8x256xi32>
    %292 = arith.andi %287, %291 : vector<8x256xi1>
    %cst_119 = arith.constant 0.000000e+00 : f32
    %293 = vector.broadcast %cst_119 : f32 to vector<8x256xf32>
    %294 = arith.select %292, %283, %293 : vector<8x256xi1>, vector<8x256xf32>
    %295 = vector.extract_strided_slice %157 {offsets = [0, 126], sizes = [8, 256], strides = [1, 1]} : vector<8x512xf32> to vector<8x256xf32>
    %c-2_i32_120 = arith.constant -2 : i32
    %296 = vector.broadcast %c-2_i32_120 : i32 to vector<8x256xi32>
    %297 = arith.addi %174, %296 : vector<8x256xi32>
    %c0_i32_121 = arith.constant 0 : i32
    %298 = vector.broadcast %c0_i32_121 : i32 to vector<8x256xi32>
    %299 = arith.cmpi sge, %297, %298 : vector<8x256xi32>
    %c-2_i32_122 = arith.constant -2 : i32
    %300 = vector.broadcast %c-2_i32_122 : i32 to vector<8x256xi32>
    %301 = arith.addi %174, %300 : vector<8x256xi32>
    %c16_i32_123 = arith.constant 16 : i32
    %302 = vector.broadcast %c16_i32_123 : i32 to vector<8x256xi32>
    %303 = arith.cmpi slt, %301, %302 : vector<8x256xi32>
    %304 = arith.andi %299, %303 : vector<8x256xi1>
    %cst_124 = arith.constant 0.000000e+00 : f32
    %305 = vector.broadcast %cst_124 : f32 to vector<8x256xf32>
    %306 = arith.select %304, %295, %305 : vector<8x256xi1>, vector<8x256xf32>
    %307 = vector.extract_strided_slice %157 {offsets = [0, 127], sizes = [8, 256], strides = [1, 1]} : vector<8x512xf32> to vector<8x256xf32>
    %c-1_i32_125 = arith.constant -1 : i32
    %308 = vector.broadcast %c-1_i32_125 : i32 to vector<8x256xi32>
    %309 = arith.addi %174, %308 : vector<8x256xi32>
    %c0_i32_126 = arith.constant 0 : i32
    %310 = vector.broadcast %c0_i32_126 : i32 to vector<8x256xi32>
    %311 = arith.cmpi sge, %309, %310 : vector<8x256xi32>
    %c-1_i32_127 = arith.constant -1 : i32
    %312 = vector.broadcast %c-1_i32_127 : i32 to vector<8x256xi32>
    %313 = arith.addi %174, %312 : vector<8x256xi32>
    %c16_i32_128 = arith.constant 16 : i32
    %314 = vector.broadcast %c16_i32_128 : i32 to vector<8x256xi32>
    %315 = arith.cmpi slt, %313, %314 : vector<8x256xi32>
    %316 = arith.andi %311, %315 : vector<8x256xi1>
    %cst_129 = arith.constant 0.000000e+00 : f32
    %317 = vector.broadcast %cst_129 : f32 to vector<8x256xf32>
    %318 = arith.select %316, %307, %317 : vector<8x256xi1>, vector<8x256xf32>
    %319 = vector.extract_strided_slice %157 {offsets = [0, 128], sizes = [8, 256], strides = [1, 1]} : vector<8x512xf32> to vector<8x256xf32>
    %c0_i32_130 = arith.constant 0 : i32
    %320 = vector.broadcast %c0_i32_130 : i32 to vector<8x256xi32>
    %321 = arith.addi %174, %320 : vector<8x256xi32>
    %c0_i32_131 = arith.constant 0 : i32
    %322 = vector.broadcast %c0_i32_131 : i32 to vector<8x256xi32>
    %323 = arith.cmpi sge, %321, %322 : vector<8x256xi32>
    %c0_i32_132 = arith.constant 0 : i32
    %324 = vector.broadcast %c0_i32_132 : i32 to vector<8x256xi32>
    %325 = arith.addi %174, %324 : vector<8x256xi32>
    %c16_i32_133 = arith.constant 16 : i32
    %326 = vector.broadcast %c16_i32_133 : i32 to vector<8x256xi32>
    %327 = arith.cmpi slt, %325, %326 : vector<8x256xi32>
    %328 = arith.andi %323, %327 : vector<8x256xi1>
    %cst_134 = arith.constant 0.000000e+00 : f32
    %329 = vector.broadcast %cst_134 : f32 to vector<8x256xf32>
    %330 = arith.select %328, %319, %329 : vector<8x256xi1>, vector<8x256xf32>
    %331 = vector.extract_strided_slice %157 {offsets = [0, 129], sizes = [8, 256], strides = [1, 1]} : vector<8x512xf32> to vector<8x256xf32>
    %c1_i32_135 = arith.constant 1 : i32
    %332 = vector.broadcast %c1_i32_135 : i32 to vector<8x256xi32>
    %333 = arith.addi %174, %332 : vector<8x256xi32>
    %c0_i32_136 = arith.constant 0 : i32
    %334 = vector.broadcast %c0_i32_136 : i32 to vector<8x256xi32>
    %335 = arith.cmpi sge, %333, %334 : vector<8x256xi32>
    %c1_i32_137 = arith.constant 1 : i32
    %336 = vector.broadcast %c1_i32_137 : i32 to vector<8x256xi32>
    %337 = arith.addi %174, %336 : vector<8x256xi32>
    %c16_i32_138 = arith.constant 16 : i32
    %338 = vector.broadcast %c16_i32_138 : i32 to vector<8x256xi32>
    %339 = arith.cmpi slt, %337, %338 : vector<8x256xi32>
    %340 = arith.andi %335, %339 : vector<8x256xi1>
    %cst_139 = arith.constant 0.000000e+00 : f32
    %341 = vector.broadcast %cst_139 : f32 to vector<8x256xf32>
    %342 = arith.select %340, %331, %341 : vector<8x256xi1>, vector<8x256xf32>
    %343 = vector.extract_strided_slice %157 {offsets = [0, 130], sizes = [8, 256], strides = [1, 1]} : vector<8x512xf32> to vector<8x256xf32>
    %c2_i32_140 = arith.constant 2 : i32
    %344 = vector.broadcast %c2_i32_140 : i32 to vector<8x256xi32>
    %345 = arith.addi %174, %344 : vector<8x256xi32>
    %c0_i32_141 = arith.constant 0 : i32
    %346 = vector.broadcast %c0_i32_141 : i32 to vector<8x256xi32>
    %347 = arith.cmpi sge, %345, %346 : vector<8x256xi32>
    %c2_i32_142 = arith.constant 2 : i32
    %348 = vector.broadcast %c2_i32_142 : i32 to vector<8x256xi32>
    %349 = arith.addi %174, %348 : vector<8x256xi32>
    %c16_i32_143 = arith.constant 16 : i32
    %350 = vector.broadcast %c16_i32_143 : i32 to vector<8x256xi32>
    %351 = arith.cmpi slt, %349, %350 : vector<8x256xi32>
    %352 = arith.andi %347, %351 : vector<8x256xi1>
    %cst_144 = arith.constant 0.000000e+00 : f32
    %353 = vector.broadcast %cst_144 : f32 to vector<8x256xf32>
    %354 = arith.select %352, %343, %353 : vector<8x256xi1>, vector<8x256xf32>
    %355 = vector.extract_strided_slice %157 {offsets = [0, 142], sizes = [8, 256], strides = [1, 1]} : vector<8x512xf32> to vector<8x256xf32>
    %c-2_i32_145 = arith.constant -2 : i32
    %356 = vector.broadcast %c-2_i32_145 : i32 to vector<8x256xi32>
    %357 = arith.addi %174, %356 : vector<8x256xi32>
    %c0_i32_146 = arith.constant 0 : i32
    %358 = vector.broadcast %c0_i32_146 : i32 to vector<8x256xi32>
    %359 = arith.cmpi sge, %357, %358 : vector<8x256xi32>
    %c-2_i32_147 = arith.constant -2 : i32
    %360 = vector.broadcast %c-2_i32_147 : i32 to vector<8x256xi32>
    %361 = arith.addi %174, %360 : vector<8x256xi32>
    %c16_i32_148 = arith.constant 16 : i32
    %362 = vector.broadcast %c16_i32_148 : i32 to vector<8x256xi32>
    %363 = arith.cmpi slt, %361, %362 : vector<8x256xi32>
    %364 = arith.andi %359, %363 : vector<8x256xi1>
    %cst_149 = arith.constant 0.000000e+00 : f32
    %365 = vector.broadcast %cst_149 : f32 to vector<8x256xf32>
    %366 = arith.select %364, %355, %365 : vector<8x256xi1>, vector<8x256xf32>
    %367 = vector.extract_strided_slice %157 {offsets = [0, 143], sizes = [8, 256], strides = [1, 1]} : vector<8x512xf32> to vector<8x256xf32>
    %c-1_i32_150 = arith.constant -1 : i32
    %368 = vector.broadcast %c-1_i32_150 : i32 to vector<8x256xi32>
    %369 = arith.addi %174, %368 : vector<8x256xi32>
    %c0_i32_151 = arith.constant 0 : i32
    %370 = vector.broadcast %c0_i32_151 : i32 to vector<8x256xi32>
    %371 = arith.cmpi sge, %369, %370 : vector<8x256xi32>
    %c-1_i32_152 = arith.constant -1 : i32
    %372 = vector.broadcast %c-1_i32_152 : i32 to vector<8x256xi32>
    %373 = arith.addi %174, %372 : vector<8x256xi32>
    %c16_i32_153 = arith.constant 16 : i32
    %374 = vector.broadcast %c16_i32_153 : i32 to vector<8x256xi32>
    %375 = arith.cmpi slt, %373, %374 : vector<8x256xi32>
    %376 = arith.andi %371, %375 : vector<8x256xi1>
    %cst_154 = arith.constant 0.000000e+00 : f32
    %377 = vector.broadcast %cst_154 : f32 to vector<8x256xf32>
    %378 = arith.select %376, %367, %377 : vector<8x256xi1>, vector<8x256xf32>
    %379 = vector.extract_strided_slice %157 {offsets = [0, 144], sizes = [8, 256], strides = [1, 1]} : vector<8x512xf32> to vector<8x256xf32>
    %c0_i32_155 = arith.constant 0 : i32
    %380 = vector.broadcast %c0_i32_155 : i32 to vector<8x256xi32>
    %381 = arith.addi %174, %380 : vector<8x256xi32>
    %c0_i32_156 = arith.constant 0 : i32
    %382 = vector.broadcast %c0_i32_156 : i32 to vector<8x256xi32>
    %383 = arith.cmpi sge, %381, %382 : vector<8x256xi32>
    %c0_i32_157 = arith.constant 0 : i32
    %384 = vector.broadcast %c0_i32_157 : i32 to vector<8x256xi32>
    %385 = arith.addi %174, %384 : vector<8x256xi32>
    %c16_i32_158 = arith.constant 16 : i32
    %386 = vector.broadcast %c16_i32_158 : i32 to vector<8x256xi32>
    %387 = arith.cmpi slt, %385, %386 : vector<8x256xi32>
    %388 = arith.andi %383, %387 : vector<8x256xi1>
    %cst_159 = arith.constant 0.000000e+00 : f32
    %389 = vector.broadcast %cst_159 : f32 to vector<8x256xf32>
    %390 = arith.select %388, %379, %389 : vector<8x256xi1>, vector<8x256xf32>
    %391 = vector.extract_strided_slice %157 {offsets = [0, 145], sizes = [8, 256], strides = [1, 1]} : vector<8x512xf32> to vector<8x256xf32>
    %c1_i32_160 = arith.constant 1 : i32
    %392 = vector.broadcast %c1_i32_160 : i32 to vector<8x256xi32>
    %393 = arith.addi %174, %392 : vector<8x256xi32>
    %c0_i32_161 = arith.constant 0 : i32
    %394 = vector.broadcast %c0_i32_161 : i32 to vector<8x256xi32>
    %395 = arith.cmpi sge, %393, %394 : vector<8x256xi32>
    %c1_i32_162 = arith.constant 1 : i32
    %396 = vector.broadcast %c1_i32_162 : i32 to vector<8x256xi32>
    %397 = arith.addi %174, %396 : vector<8x256xi32>
    %c16_i32_163 = arith.constant 16 : i32
    %398 = vector.broadcast %c16_i32_163 : i32 to vector<8x256xi32>
    %399 = arith.cmpi slt, %397, %398 : vector<8x256xi32>
    %400 = arith.andi %395, %399 : vector<8x256xi1>
    %cst_164 = arith.constant 0.000000e+00 : f32
    %401 = vector.broadcast %cst_164 : f32 to vector<8x256xf32>
    %402 = arith.select %400, %391, %401 : vector<8x256xi1>, vector<8x256xf32>
    %403 = vector.extract_strided_slice %157 {offsets = [0, 146], sizes = [8, 256], strides = [1, 1]} : vector<8x512xf32> to vector<8x256xf32>
    %c2_i32_165 = arith.constant 2 : i32
    %404 = vector.broadcast %c2_i32_165 : i32 to vector<8x256xi32>
    %405 = arith.addi %174, %404 : vector<8x256xi32>
    %c0_i32_166 = arith.constant 0 : i32
    %406 = vector.broadcast %c0_i32_166 : i32 to vector<8x256xi32>
    %407 = arith.cmpi sge, %405, %406 : vector<8x256xi32>
    %c2_i32_167 = arith.constant 2 : i32
    %408 = vector.broadcast %c2_i32_167 : i32 to vector<8x256xi32>
    %409 = arith.addi %174, %408 : vector<8x256xi32>
    %c16_i32_168 = arith.constant 16 : i32
    %410 = vector.broadcast %c16_i32_168 : i32 to vector<8x256xi32>
    %411 = arith.cmpi slt, %409, %410 : vector<8x256xi32>
    %412 = arith.andi %407, %411 : vector<8x256xi1>
    %cst_169 = arith.constant 0.000000e+00 : f32
    %413 = vector.broadcast %cst_169 : f32 to vector<8x256xf32>
    %414 = arith.select %412, %403, %413 : vector<8x256xi1>, vector<8x256xf32>
    %415 = vector.extract_strided_slice %157 {offsets = [0, 158], sizes = [8, 256], strides = [1, 1]} : vector<8x512xf32> to vector<8x256xf32>
    %c-2_i32_170 = arith.constant -2 : i32
    %416 = vector.broadcast %c-2_i32_170 : i32 to vector<8x256xi32>
    %417 = arith.addi %174, %416 : vector<8x256xi32>
    %c0_i32_171 = arith.constant 0 : i32
    %418 = vector.broadcast %c0_i32_171 : i32 to vector<8x256xi32>
    %419 = arith.cmpi sge, %417, %418 : vector<8x256xi32>
    %c-2_i32_172 = arith.constant -2 : i32
    %420 = vector.broadcast %c-2_i32_172 : i32 to vector<8x256xi32>
    %421 = arith.addi %174, %420 : vector<8x256xi32>
    %c16_i32_173 = arith.constant 16 : i32
    %422 = vector.broadcast %c16_i32_173 : i32 to vector<8x256xi32>
    %423 = arith.cmpi slt, %421, %422 : vector<8x256xi32>
    %424 = arith.andi %419, %423 : vector<8x256xi1>
    %cst_174 = arith.constant 0.000000e+00 : f32
    %425 = vector.broadcast %cst_174 : f32 to vector<8x256xf32>
    %426 = arith.select %424, %415, %425 : vector<8x256xi1>, vector<8x256xf32>
    %427 = vector.extract_strided_slice %157 {offsets = [0, 159], sizes = [8, 256], strides = [1, 1]} : vector<8x512xf32> to vector<8x256xf32>
    %c-1_i32_175 = arith.constant -1 : i32
    %428 = vector.broadcast %c-1_i32_175 : i32 to vector<8x256xi32>
    %429 = arith.addi %174, %428 : vector<8x256xi32>
    %c0_i32_176 = arith.constant 0 : i32
    %430 = vector.broadcast %c0_i32_176 : i32 to vector<8x256xi32>
    %431 = arith.cmpi sge, %429, %430 : vector<8x256xi32>
    %c-1_i32_177 = arith.constant -1 : i32
    %432 = vector.broadcast %c-1_i32_177 : i32 to vector<8x256xi32>
    %433 = arith.addi %174, %432 : vector<8x256xi32>
    %c16_i32_178 = arith.constant 16 : i32
    %434 = vector.broadcast %c16_i32_178 : i32 to vector<8x256xi32>
    %435 = arith.cmpi slt, %433, %434 : vector<8x256xi32>
    %436 = arith.andi %431, %435 : vector<8x256xi1>
    %cst_179 = arith.constant 0.000000e+00 : f32
    %437 = vector.broadcast %cst_179 : f32 to vector<8x256xf32>
    %438 = arith.select %436, %427, %437 : vector<8x256xi1>, vector<8x256xf32>
    %439 = vector.extract_strided_slice %157 {offsets = [0, 160], sizes = [8, 256], strides = [1, 1]} : vector<8x512xf32> to vector<8x256xf32>
    %c0_i32_180 = arith.constant 0 : i32
    %440 = vector.broadcast %c0_i32_180 : i32 to vector<8x256xi32>
    %441 = arith.addi %174, %440 : vector<8x256xi32>
    %c0_i32_181 = arith.constant 0 : i32
    %442 = vector.broadcast %c0_i32_181 : i32 to vector<8x256xi32>
    %443 = arith.cmpi sge, %441, %442 : vector<8x256xi32>
    %c0_i32_182 = arith.constant 0 : i32
    %444 = vector.broadcast %c0_i32_182 : i32 to vector<8x256xi32>
    %445 = arith.addi %174, %444 : vector<8x256xi32>
    %c16_i32_183 = arith.constant 16 : i32
    %446 = vector.broadcast %c16_i32_183 : i32 to vector<8x256xi32>
    %447 = arith.cmpi slt, %445, %446 : vector<8x256xi32>
    %448 = arith.andi %443, %447 : vector<8x256xi1>
    %cst_184 = arith.constant 0.000000e+00 : f32
    %449 = vector.broadcast %cst_184 : f32 to vector<8x256xf32>
    %450 = arith.select %448, %439, %449 : vector<8x256xi1>, vector<8x256xf32>
    %451 = vector.extract_strided_slice %157 {offsets = [0, 161], sizes = [8, 256], strides = [1, 1]} : vector<8x512xf32> to vector<8x256xf32>
    %c1_i32_185 = arith.constant 1 : i32
    %452 = vector.broadcast %c1_i32_185 : i32 to vector<8x256xi32>
    %453 = arith.addi %174, %452 : vector<8x256xi32>
    %c0_i32_186 = arith.constant 0 : i32
    %454 = vector.broadcast %c0_i32_186 : i32 to vector<8x256xi32>
    %455 = arith.cmpi sge, %453, %454 : vector<8x256xi32>
    %c1_i32_187 = arith.constant 1 : i32
    %456 = vector.broadcast %c1_i32_187 : i32 to vector<8x256xi32>
    %457 = arith.addi %174, %456 : vector<8x256xi32>
    %c16_i32_188 = arith.constant 16 : i32
    %458 = vector.broadcast %c16_i32_188 : i32 to vector<8x256xi32>
    %459 = arith.cmpi slt, %457, %458 : vector<8x256xi32>
    %460 = arith.andi %455, %459 : vector<8x256xi1>
    %cst_189 = arith.constant 0.000000e+00 : f32
    %461 = vector.broadcast %cst_189 : f32 to vector<8x256xf32>
    %462 = arith.select %460, %451, %461 : vector<8x256xi1>, vector<8x256xf32>
    %463 = vector.extract_strided_slice %157 {offsets = [0, 162], sizes = [8, 256], strides = [1, 1]} : vector<8x512xf32> to vector<8x256xf32>
    %c2_i32_190 = arith.constant 2 : i32
    %464 = vector.broadcast %c2_i32_190 : i32 to vector<8x256xi32>
    %465 = arith.addi %174, %464 : vector<8x256xi32>
    %c0_i32_191 = arith.constant 0 : i32
    %466 = vector.broadcast %c0_i32_191 : i32 to vector<8x256xi32>
    %467 = arith.cmpi sge, %465, %466 : vector<8x256xi32>
    %c2_i32_192 = arith.constant 2 : i32
    %468 = vector.broadcast %c2_i32_192 : i32 to vector<8x256xi32>
    %469 = arith.addi %174, %468 : vector<8x256xi32>
    %c16_i32_193 = arith.constant 16 : i32
    %470 = vector.broadcast %c16_i32_193 : i32 to vector<8x256xi32>
    %471 = arith.cmpi slt, %469, %470 : vector<8x256xi32>
    %472 = arith.andi %467, %471 : vector<8x256xi1>
    %cst_194 = arith.constant 0.000000e+00 : f32
    %473 = vector.broadcast %cst_194 : f32 to vector<8x256xf32>
    %474 = arith.select %472, %463, %473 : vector<8x256xi1>, vector<8x256xf32>
    %475 = tpu.concatenate %186, %198, %210, %222, %234, %246, %258, %270, %282, %294, %306, %318, %330, %342, %354, %366 in 0 : vector<8x256xf32>, vector<8x256xf32>, vector<8x256xf32>, vector<8x256xf32>, vector<8x256xf32>, vector<8x256xf32>, vector<8x256xf32>, vector<8x256xf32>, vector<8x256xf32>, vector<8x256xf32>, vector<8x256xf32>, vector<8x256xf32>, vector<8x256xf32>, vector<8x256xf32>, vector<8x256xf32>, vector<8x256xf32> -> vector<128x256xf32>
    %476 = tpu.concatenate %378, %390, %402, %414, %426, %438, %450, %462, %474 in 0 : vector<8x256xf32>, vector<8x256xf32>, vector<8x256xf32>, vector<8x256xf32>, vector<8x256xf32>, vector<8x256xf32>, vector<8x256xf32>, vector<8x256xf32>, vector<8x256xf32> -> vector<72x256xf32>
    %477 = tpu.concatenate %475, %476 in 0 : vector<128x256xf32>, vector<72x256xf32> -> vector<200x256xf32>
    %478 = arith.truncf %477 : vector<200x256xf32> to vector<200x256xbf16>
    %c0_195 = arith.constant 0 : index
    %c0_196 = arith.constant 0 : index
    %479 = vector.load %arg8[%c0_195, %c0_196] : memref<8x200xbf16, #tpu.memory_space<vmem>>, vector<8x200xbf16>
    %cst_197 = arith.constant dense<0.000000e+00> : vector<8x256xf32>
    %480 = tpu.matmul %479, %478, %cst_197 {dimension_numbers = #tpu.dot_dimension_numbers<[1], [0], [0], [1], [0, 0, 1, 1], [], []>} : vector<8x200xbf16>, vector<200x256xbf16>, vector<8x256xf32> -> vector<8x256xf32>
    %c0_198 = arith.constant 0 : index
    %c0_199 = arith.constant 0 : index
    %481 = vector.load %arg9[%c0_198, %c0_199] : memref<8x1xf32, #tpu.memory_space<vmem>>, vector<8x1xf32>
    %482 = vector.broadcast %481 : vector<8x1xf32> to vector<8x256xf32>
    %483 = arith.mulf %480, %482 : vector<8x256xf32>
    %c0_200 = arith.constant 0 : index
    %c0_201 = arith.constant 0 : index
    %484 = vector.load %arg10[%c0_200, %c0_201] : memref<8x1xf32, #tpu.memory_space<vmem>>, vector<8x1xf32>
    %485 = vector.broadcast %484 : vector<8x1xf32> to vector<8x256xf32>
    %486 = arith.addf %483, %485 : vector<8x256xf32>
    %cst_202 = arith.constant 0.000000e+00 : f32
    %487 = vector.broadcast %cst_202 : f32 to vector<8x256xf32>
    %488 = arith.maximumf %486, %487 : vector<8x256xf32>
    %489 = tpu.concatenate %13, %155, %488, %16 in 0 : vector<8x256xf32>, vector<8x256xf32>, vector<8x256xf32>, vector<8x256xf32> -> vector<32x256xf32>
    %c0_203 = arith.constant 0 : index
    %c0_204 = arith.constant 0 : index
    %c0_205 = arith.constant 0 : index
    %490 = vector.load %arg11[%c0_203, %c0_204, %c0_205] : memref<1x32x256xf32, #tpu.memory_space<vmem>>, vector<1x32x256xf32>
    %491 = vector.shape_cast %490 : vector<1x32x256xf32> to vector<32x256xf32>
    %492 = vector.shape_cast %489 : vector<32x256xf32> to vector<1x32x256xf32>
    tpu.vector_store %arg11[%c0_203, %c0_204, %c0_205], %492 {strides = array<i32>} : memref<1x32x256xf32, #tpu.memory_space<vmem>>, vector<1x32x256xf32>,
    return
  }
  func.func @transform_0(%arg0: i32) -> (i32, i32, i32) {
    %c0_i32 = arith.constant 0 : i32
    %c0_i32_0 = arith.constant 0 : i32
    %c0_i32_1 = arith.constant 0 : i32
    return %arg0, %c0_i32, %c0_i32_0 : i32, i32, i32
  }
  func.func @transform_1(%arg0: i32) -> (i32, i32) {
    %c0_i32 = arith.constant 0 : i32
    %c0_i32_0 = arith.constant 0 : i32
    %c0_i32_1 = arith.constant 0 : i32
    return %c0_i32, %c0_i32_0 : i32, i32
  }
  func.func @transform_2(%arg0: i32) -> (i32, i32) {
    %c0_i32 = arith.constant 0 : i32
    %c0_i32_0 = arith.constant 0 : i32
    %c0_i32_1 = arith.constant 0 : i32
    return %c0_i32, %c0_i32_0 : i32, i32
  }
  func.func @transform_3(%arg0: i32) -> (i32, i32) {
    %c0_i32 = arith.constant 0 : i32
    %c0_i32_0 = arith.constant 0 : i32
    %c0_i32_1 = arith.constant 0 : i32
    return %c0_i32, %c0_i32_0 : i32, i32
  }
  func.func @transform_4(%arg0: i32) -> (i32, i32) {
    %c0_i32 = arith.constant 0 : i32
    %c0_i32_0 = arith.constant 0 : i32
    %c0_i32_1 = arith.constant 0 : i32
    return %c0_i32, %c0_i32_0 : i32, i32
  }
  func.func @transform_5(%arg0: i32) -> (i32, i32) {
    %c0_i32 = arith.constant 0 : i32
    %c0_i32_0 = arith.constant 0 : i32
    %c0_i32_1 = arith.constant 0 : i32
    return %c0_i32, %c0_i32_0 : i32, i32
  }
  func.func @transform_6(%arg0: i32) -> (i32, i32) {
    %c0_i32 = arith.constant 0 : i32
    %c0_i32_0 = arith.constant 0 : i32
    %c0_i32_1 = arith.constant 0 : i32
    return %c0_i32, %c0_i32_0 : i32, i32
  }
  func.func @transform_7(%arg0: i32) -> (i32, i32) {
    %c0_i32 = arith.constant 0 : i32
    %c0_i32_0 = arith.constant 0 : i32
    %c0_i32_1 = arith.constant 0 : i32
    return %c0_i32, %c0_i32_0 : i32, i32
  }
  func.func @transform_8(%arg0: i32) -> (i32, i32) {
    %c0_i32 = arith.constant 0 : i32
    %c0_i32_0 = arith.constant 0 : i32
    %c0_i32_1 = arith.constant 0 : i32
    return %c0_i32, %c0_i32_0 : i32, i32
  }
  func.func @transform_9(%arg0: i32) -> (i32, i32) {
    %c0_i32 = arith.constant 0 : i32
    %c0_i32_0 = arith.constant 0 : i32
    %c0_i32_1 = arith.constant 0 : i32
    return %c0_i32, %c0_i32_0 : i32, i32
  }
  func.func @transform_10(%arg0: i32) -> (i32, i32, i32) {
    %c0_i32 = arith.constant 0 : i32
    %c0_i32_0 = arith.constant 0 : i32
    %c0_i32_1 = arith.constant 0 : i32
    return %arg0, %c0_i32, %c0_i32_0 : i32, i32, i32
  }
}

</mosaic_0001>

<bundles_post_ra>
// kernel: a_call__.1
= control target key start
LH: loop header
LB: loop body
LE: loop exit
PB: predicated region body
PF: predicated region fallthrough
CT: control target
= control target key end

     0   :  { %s1620_s13 = smov 0   ;;  %s2181_s0 = inlined_call_operand.vmem [shape: f32[2,4,256], index: 0, kind: input, shape index: {}]   ;;  %s2182_s1 = inlined_call_operand.vmem [shape: bf16[32,4], index: 1, kind: input, shape index: {}]   ;;  %s2183_s2 = inlined_call_operand.vmem [shape: f32[32,1], index: 2, kind: input, shape index: {}]   ;;  %s2184_s3 = inlined_call_operand.vmem [shape: f32[32,1], index: 3, kind: input, shape index: {}]   ;;  %s2185_s4 = inlined_call_operand.vmem [shape: bf16[8,72], index: 4, kind: input, shape index: {}]   ;;  %s2186_s5 = inlined_call_operand.vmem [shape: f32[8,1], index: 5, kind: input, shape index: {}]   ;;  %s2187_s6 = inlined_call_operand.vmem [shape: f32[8,1], index: 6, kind: input, shape index: {}]   ;;  %s2188_s7 = inlined_call_operand.vmem [shape: bf16[8,200], index: 7, kind: input, shape index: {}]   ;;  %s2189_s8 = inlined_call_operand.vmem [shape: f32[8,1], index: 8, kind: input, shape index: {}]   ;;  %s2190_s9 = inlined_call_operand.vmem [shape: f32[8,1], index: 9, kind: input, shape index: {}]   ;;  %s2191_s10 = inlined_call_operand.vmem [shape: f32[2,32,256], index: 10, kind: output, shape index: {}]  }
   0x1 LB: > { %s1215_s14 = sadd.s32 4294967295, %s1536_s13   ;;  %p1219_p0 = scmp.ge.s32.totalorder %s1536_s13, 1  ;;  %s1536_s13 = sphi %s1620_s13, %s20_s13  }
   0x2   : > { %p312_p1 = scmp.lt.s32.totalorder %s1536_s13, 3 }
   0x4   : > { %p313_p2 = pnand %p1219_p0, %p312_p1 }
   0x5   : > { %p350_p3 = scmp.lt.s32.totalorder (!%p313_p2), %s1215_s14, 1  ;;  %s1540_s19 = smov (!%p313_p2), 2  }
   0x6   : > { %316 = sbr.rel (%p313_p2) target bundleno = 555 (0x22b), region = 60  ;;  %s1542_s23 = smov (!%p313_p2), 14  }
   0x7   : > { %s1543_s24 = smov (!%p313_p2), 113   ;;  %s1544_s27 = smov (!%p313_p2), 32  }
   0x8   : > { %s1545_s28 = smov (!%p313_p2), 18   ;;  %s1546_s29 = smov (!%p313_p2), 30  }
   0x9   : > { %s1547_s30 = smov (!%p313_p2), 31   ;;  %s1548_s11 = smov (!%p313_p2), 34  }
   0xa   : > { %s1550_s18 = smov (!%p313_p2), 16   ;;  %s1551_s21 = smov (!%p313_p2), 17  }
   0xb   : > { %v436_v0 = vld [vmem:[%s2183_s2] sm:$0xff]  ;;  %v1538_v1 = vmov 0   ;;  %s2253_s14 = smov (!%p350_p3, %s1215_s14), 1  ;;  %v438_v3 = vld [vmem:[%s2183_s2 + $0x10] sm:$0xff]  ;;  %v437_v5 = vld [vmem:[%s2183_s2 + $0x8] sm:$0xff]  ;;  %vm391_vm0 = vcmask 1041408  }
   0xc   : > { %1377 = vset.pattern.permute.xlu0 %v1538_v1  ;;  %1378 = vset.pattern.permute.xlu1 %v1538_v1  ;;  %s1338_s17 = sshll.u32 %s2253_s14, 3  ;;  %v468_v4 = vld [vmem:[%s2184_s3] sm:$0xff]  ;;  %v439_v6 = vld [vmem:[%s2183_s2 + $0x18] sm:$0xff]  ;;  %v469_v7 = vld [vmem:[%s2184_s3 + $0x8] sm:$0xff]  ;;  %vm384_vm1 = vcmask 31744   ;;  %v1539_v17 = vmov 0.0  }
   0xd   : > { %442 = vperm.xlu0 %1377, %v436_v0   ;;  %1379 = vset.pattern.permute.xlu2 %v1538_v1  ;;  %s354_s20 = scalar_lea.vmem %s2181_s0, %s1338_s17  ;;  %v470_v10 = vld [vmem:[%s2184_s3 + $0x10] sm:$0xff]  ;;  %v1340_v15 = vld [vmem:[%s2182_s1] sm:$0xff]  ;;  %v471_v16 = vld [vmem:[%s2184_s3 + $0x18] sm:$0xff]  ;;  %s1339_s12 = sshll.u32 %s2253_s14, 6  ;;  %vm2192_vm2 = vcmask 908288   ;;  %vm2193_vm3 = vcmask 916480  }
   0xe   : > { %v361_v2 = vld [vmem:[%s354_s20] sm:$0xff]  ;;  %452 = vperm.xlu1 %1378, %v438_v3   ;;  %474 = vperm.xlu2 %1379, %v468_v4   ;;  %s1541_s20 = smov 112   ;;  %v1341_v19 = vld [vmem:[%s2182_s1 + $0x8] sm:$0xff]  ;;  %s1693_s17 = scalar_lea.vmem %s2191_s10, %s1339_s12  ;;  %vm2194_vm6 = vcmask 924672   ;;  %vm2198_vm7 = vcmask 1043456   ;;  %vm2202_vm10 = vcmask 1039360  }
   0xf   : > { %363 = vst [vmem:[#allocation1] ss:$2 sm:$0xff] %v361_v2  ;;  %v714_v18 = vld [vmem:[%s2186_s5] sm:$0xff]  ;;  %s1549_s14 = smov 15   ;;  %s1552_s22 = smov 127   ;;  %vm1564_vm11 = vmmov 1  }
  0x10   : > { %s1553_s25 = smov 1   ;;  %s1554_s26 = smov 111   ;;  %vm2195_vm14 = vcmask 121856   ;;  %vm605_vm15 = vcmask 7168  }
  0x11   : > { %s1555_s12 = smov 126   ;;  %s1556_s15 = smov 114  }
  0x12   : > { %s1557_s16 = smov 95  }
  0x15   : > { %447 = vperm.xlu0 %1377, %v437_v5  }
  0x16   : > { %v364_v8 = vld.sshfl [vmem:[#allocation1] sm:$0xff pattern:$0x75316420]  ;;  %v365_v9 = vld.sshfl [vmem:[#allocation1 + $0x8] sm:$0xff pattern:$0x75316420]  ;;  %457 = vperm.xlu1 %1378, %v439_v6   ;;  %479 = vperm.xlu2 %1379, %v469_v7  }
  0x17   : > { %v368_v11 = vpack.c.bf16 %v364_v8, %v364_v8  ;;  %v369_v12 = vpack.c.bf16 %v365_v9, %v365_v9 }
  0x19   : > { %v393_v13 = vsel %vm391_vm0, %v368_v11, 0  ;;  %v396_v14 = vsel %vm391_vm0, %v369_v12, 0  ;;  %vm2200_vm0 = vcmask 138240  }
  0x1a   : > { %405 = vmatpush.bf16.msra.mxu0 %v393_v13  ;;  %424 = vmatpush.bf16.msra.mxu1 %v396_v14 }
  0x1d   : > { %484 = vperm.xlu0 %1377, %v470_v10   ;;  %1232 = vmatmul.msk.bf16.vlgmr.msra.gmra.mxu0 %vm384_vm1, %v1340_v15 }
  0x1e   : > { %1234 = vmatmul.msk.bf16.vlgmr.msra.gmra.mxu1 %vm384_vm1, %v1340_v15  ;;  %489 = vperm.xlu1 %1378, %v471_v16   ;;  %v508_v15 = vlaneseq }
  0x1f   : > { %871 = vrot.lane.b32.xlu2 %v1539_v17, %s1540_s19 }
  0x25   : > { %644 = vrot.lane.b32.xlu0 %v1539_v17, %s1541_s20 }
  0x26   : > { %631 = vrot.lane.b32.xlu1 %v1539_v17, %s1543_s24 }
  0x27   : > { %858 = vrot.lane.b32.xlu2 %v1539_v17, %s1542_s23 }
  0x2d   : > { %717 = vperm.xlu0 %1377, %v714_v18   ;;  %1233 = vmatmul.msk.bf16.gmra.mxu0 %vm384_vm1, %v1341_v19 }
  0x2e   : > { %1235 = vmatmul.msk.bf16.gmra.mxu1 %vm384_vm1, %v1341_v19  ;;  %815 = vrot.lane.b32.xlu1 %v1539_v17, %s1545_s28 }
  0x2f   : > { %768 = vrot.lane.b32.xlu2 %v1539_v17, %s1544_s27 }
  0x35   : > { %802 = vrot.lane.b32.xlu0 %v1539_v17, %s1546_s29 }
  0x3d   : > { %781 = vrot.lane.b32.xlu0 %v1539_v17, %s1547_s30 }
  0x45   : > { %742 = vrot.lane.b32.xlu0 %v1539_v17, %s1548_s11 }
  0x68   : > { %v475_v21 = vpop.permute.xlu2 %474 }
  0x70   : > { %v480_v35 = vpop.permute.xlu2 %479 }
  0x79   : > { %v1741_v2 = vpop.permute.xlu2 %871 }
  0x7f   : > { %v443_v20 = vpop.permute.xlu0 %442 }
  0x80   : > { %v453_v28 = vpop.permute.xlu1 %452 }
  0x81   : > { %v1747_v4 = vpop.permute.xlu2 %858 }
  0x87   : > { %v448_v31 = vpop.permute.xlu0 %447 }
  0x88   : > { %v458_v39 = vpop.permute.xlu1 %457 }
  0x89   : > { %v1754_v6 = vpop.permute.xlu2 %768 }
  0x8f   : > { %v485_v46 = vpop.permute.xlu0 %484 }
  0x90   : > { %v490_v50 = vpop.permute.xlu1 %489 }
  0x97   : > { %v1745_v3 = vpop.permute.xlu0 %644 }
  0x98   : > { %v1763_v9 = vpop.permute.xlu1 %631 }
  0x9a   : > { %v407_v22 = vpop.f32.mrf.mxu0 }
  0x9b   : > { %v460_v23 = vmul.f32 %v443_v20, %v407_v22  ;;  %v426_v24 = vpop.f32.mrf.mxu1 }
  0x9c   : > { %v461_v25 = vmul.f32 %v443_v20, %v426_v24  ;;  %v509_v20 = vand.u32 127, %v508_v15 }
  0x9d   : > { %v492_v26 = vadd.f32 %v475_v21, %v460_v23 }
  0x9e   : > { %v493_v27 = vadd.f32 %v475_v21, %v461_v25  ;;  %v1142_v21 = vld [vmem:[%s2190_s9] sm:$0xff]  ;;  %v510_v22 = vadd.s32 128, %v509_v20 }
  0x9f   : > { %v500_v29 = vmax.f32 %v492_v26, 0.0  ;;  %v1751_v5 = vpop.permute.xlu0 %717  ;;  %v1801_v26 = vand.u32 15, %v509_v20 }
  0xa0   : > { %v501_v30 = vmax.f32 %v493_v27, 0.0  ;;  %v1774_v12 = vpop.permute.xlu1 %815  ;;  %v1803_v27 = vand.u32 15, %v510_v22 }
  0xa1   : > { %1152 = vst [vmem:[%s1693_s17] sm:$0xff] %v500_v29 }
  0xa2   : > { %1153 = vst [vmem:[%s1693_s17 + $0x8] sm:$0xff] %v501_v30  ;;  %v409_v32 = vpop.f32.mrf.mxu0  ;;  %v1809_v29 = vadd.s32 1, %v1803_v27 }
  0xa3   : > { %v462_v33 = vmul.f32 %v448_v31, %v409_v32  ;;  %v428_v34 = vpop.f32.mrf.mxu1 }
  0xa4   : > { %v463_v37 = vmul.f32 %v448_v31, %v428_v34  ;;  %vm2199_vm5 = vcmp.lt.s32.totalorder %v1809_v29, 16 }
  0xa5   : > { %v494_v36 = vadd.f32 %v480_v35, %v462_v33 }
  0xa6   : > { %v495_v40 = vadd.f32 %v480_v35, %v463_v37  ;;  %v1826_v37 = vadd.s32 4294967295, %v1803_v27 }
  0xa7   : > { %v1697_v38 = vmax.f32 %v494_v36, 0.0  ;;  %v1756_v7 = vpop.permute.xlu0 %802  ;;  %v1823_v36 = vadd.s32 4294967295, %v1801_v26 }
  0xa8   : > { %v1704_v44 = vmax.f32 %v495_v40, 0.0  ;;  %vm538_vm9 = vcmp.ge.s32.totalorder %v1826_v37, 0 }
  0xa9   : > { %v1390_v41 = vpack.i.bf16 %v1697_v38, %v1539_v17  ;;  %vm2197_vm8 = vcmp.ge.s32.totalorder %v1823_v36, 0  ;;  %vm1880_vm13 = vmpackc.low %vm1564_vm11, %vm538_vm9 }
  0xaa   : > { %v412_v42 = vpop.f32.mrf.mxu0  ;;  %v1405_v48 = vpack.i.bf16 %v1704_v44, %v1697_v38  ;;  %vm1869_vm12 = vmpackc.low %vm1564_vm11, %vm2197_vm8 }
  0xab   : > { %v431_v43 = vpop.f32.mrf.mxu1  ;;  %1391 = vrot.lane.b32.xlu0 %v1390_v41, %s1549_s14  ;;  %1386 = vrot.lane.b32.xlu1 %v1390_v41, %s1550_s18  ;;  %v464_v45 = vmul.f32 %v453_v28, %v412_v42 }
  0xac   : > { %1381 = vrot.lane.b32.xlu2 %v1390_v41, %s1551_s21  ;;  %v465_v60 = vmul.f32 %v453_v28, %v431_v43  ;;  %v1806_v28 = vadd.s32 1, %v1801_v26 }
  0xad   : > { %v496_v47 = vadd.f32 %v485_v46, %v464_v45  ;;  %v722_v45 = vld [vmem:[%s2187_s6] sm:$0xff] }
  0xae   : > { %v497_v61 = vadd.f32 %v485_v46, %v465_v60  ;;  %vm2196_vm4 = vcmp.lt.s32.totalorder %v1806_v28, 16 }
  0xaf   : > { %v1710_v54 = vmax.f32 %v496_v47, 0.0  ;;  %v1765_v10 = vpop.permute.xlu0 %781  ;;  %vm1900_vm1 = vmpackc.low %vm2196_vm4, %vm1564_vm11 }
  0xb0   : > { %v1721_v62 = vmax.f32 %v497_v61, 0.0 }
  0xb1   : > { %v1420_v59 = vpack.i.bf16 %v1710_v54, %v1704_v44 }
  0xb2   : > { %v414_v49 = vpop.f32.mrf.mxu0  ;;  %v1450_v63 = vpack.i.bf16 0.0, %v1721_v62  ;;  %v1440_v0 = vpack.i.bf16 %v1721_v62, %v1539_v17  ;;  %v1470_v1 = vpack.i.bf16 %v1721_v62, %v1710_v54 }
  0xb3   : > { %1406 = vrot.lane.b32.xlu0 %v1405_v48, %s1543_s24  ;;  %1401 = vrot.lane.b32.xlu1 %v1405_v48, %s1552_s22  ;;  %v466_v51 = vmul.f32 %v458_v39, %v414_v49  ;;  %v433_v52 = vpop.f32.mrf.mxu1 }
  0xb4   : > { %1396 = vrot.lane.b32.xlu2 %v1390_v41, %s1553_s25  ;;  %v467_v53 = vmul.f32 %v458_v39, %v433_v52  ;;  %v1134_v41 = vld [vmem:[%s2189_s8] sm:$0xff] }
  0xb5   : > { %v498_v55 = vadd.f32 %v490_v50, %v466_v51 }
  0xb6   : > { %v499_v56 = vadd.f32 %v490_v50, %v467_v53 }
  0xb7   : > { %v506_v57 = vmax.f32 %v498_v55, 0.0  ;;  %v1776_v13 = vpop.permute.xlu0 %742 }
  0xb8   : > { %v507_v58 = vmax.f32 %v499_v56, 0.0 }
  0xb9   : > { %1158 = vst [vmem:[%s1693_s17 + $0x30] sm:$0xff] %v506_v57 }
  0xba   : > { %1159 = vst [vmem:[%s1693_s17 + $0x38] sm:$0xff] %v507_v58 }
  0xbb   : > { %1416 = vrot.lane.b32.xlu1 %v1405_v48, %s1554_s26  ;;  %1421 = vrot.lane.b32.xlu0 %v1420_v59, %s1551_s21 }
  0xbc   : > { %1411 = vrot.lane.b32.xlu2 %v1405_v48, %s1541_s20 }
  0xc3   : > { %1431 = vrot.lane.b32.xlu1 %v1420_v59, %s1549_s14  ;;  %1436 = vrot.lane.b32.xlu0 %v1420_v59, %s1553_s25 }
  0xc4   : > { %1426 = vrot.lane.b32.xlu2 %v1420_v59, %s1550_s18 }
  0xcb   : > { %1451 = vrot.lane.b32.xlu1 %v1450_v63, %s1555_s12  ;;  %906 = vrot.lane.b32.xlu0 %v1710_v54, %s1555_s12 }
  0xcc   : > { %1441 = vrot.lane.b32.xlu2 %v1440_v0, %s1552_s22 }
  0xd3   : > { %919 = vrot.lane.b32.xlu1 %v1710_v54, %s1556_s15  ;;  %886 = vrot.lane.b32.xlu0 %v1721_v62, %s1553_s25 }
  0xd4   : > { %1446 = vrot.lane.b32.xlu2 %v1440_v0, %s1554_s26 }
  0xdb   : > { %896 = vrot.lane.b32.xlu1 %v1710_v54, %s1552_s22  ;;  %850 = vrot.lane.b32.xlu0 %v1721_v62, %s1549_s14  ;;  %s1558_s22 = smov 94   ;;  %s1561_s14 = smov 98  }
  0xdc   : > { %1456 = vrot.lane.b32.xlu2 %v1450_v63, %s1556_s15 }
  0xe3   : > { %1471 = vrot.lane.b32.xlu1 %v1470_v1, %s1542_s23  ;;  %830 = vrot.lane.b32.xlu0 %v1721_v62, %s1551_s21  ;;  %s1559_s23 = smov 96  }
  0xe4   : > { %1461 = vrot.lane.b32.xlu2 %v1470_v1, %s1540_s19  ;;  %s1560_s19 = smov 97  }
  0xeb   : > { %840 = vrot.lane.b32.xlu1 %v1721_v62, %s1550_s18  ;;  %1481 = vrot.lane.b32.xlu0 %v1450_v63, %s1557_s16 }
  0xec   : > { %1466 = vrot.lane.b32.xlu2 %v1450_v63, %s1558_s22 }
  0xf3   : > { %1027 = vrot.lane.b32.xlu1 %v1710_v54, %s1558_s22  ;;  %1486 = vrot.lane.b32.xlu0 %v1470_v1, %s1546_s29 }
  0xf4   : > { %1476 = vrot.lane.b32.xlu2 %v1450_v63, %s1559_s23 }
  0xfb   : > { %1491 = vrot.lane.b32.xlu1 %v1470_v1, %s1545_s28  ;;  %1501 = vrot.lane.b32.xlu0 %v1450_v63, %s1560_s19  ;;  %s1562_s28 = smov 110  }
  0xfc   : > { %1496 = vrot.lane.b32.xlu2 %v1450_v63, %s1561_s14 }
 0x103   : > { %1001 = vrot.lane.b32.xlu1 %v1710_v54, %s1559_s23  ;;  %1506 = vrot.lane.b32.xlu0 %v1470_v1, %s1544_s27  ;;  %s1563_s27 = smov 33  }
 0x104   : > { %1014 = vrot.lane.b32.xlu2 %v1710_v54, %s1557_s16 }
 0x106   : > { %v1761_v8 = vpop.permute.xlu2 %1381 }
 0x10b   : > { %1511 = vrot.lane.b32.xlu1 %v1470_v1, %s1547_s30  ;;  %988 = vrot.lane.b32.xlu0 %v1710_v54, %s1560_s19 }
 0x10c   : > { %1516 = vrot.lane.b32.xlu2 %v1450_v63, %s1562_s28 }
 0x10e   : > { %v1769_v11 = vpop.permute.xlu2 %1396 }
 0x10f   : > { %v1399_v0 = vunpack.i.h.bf16 %v1769_v11 }
 0x113   : > { %1521 = vrot.lane.b32.xlu1 %v1470_v1, %s1548_s11  ;;  %934 = vrot.lane.b32.xlu0 %v1721_v62, %s1543_s24 }
 0x114   : > { %975 = vrot.lane.b32.xlu2 %v1710_v54, %s1561_s14 }
 0x116   : > { %v1779_v14 = vpop.permute.xlu2 %1411 }
 0x117   : > { %v1414_v43 = vunpack.i.h.bf16 %v1779_v14  ;;  %v1413_v48 = vunpack.i.l.bf16 %v1779_v14 }
 0x119   : > { %v647_v15 = vsel %vm2193_vm3, %v1413_v48, %v1414_v43 }
 0x11b   : > { %944 = vrot.lane.b32.xlu1 %v1721_v62, %s1541_s20  ;;  %942 = vrot.lane.b32.xlu0 %v1710_v54, %s1541_s20 }
 0x11c   : > { %1526 = vrot.lane.b32.xlu2 %v1470_v1, %s1563_s27  ;;  %v1398_v1 = vunpack.i.l.bf16 %v1769_v11 }
 0x11d   : > { %v1785_v16 = vpop.permute.xlu0 %1391  ;;  %v1787_v18 = vpop.permute.xlu1 %1386 }
 0x11e   : > { %v1789_v19 = vpop.permute.xlu2 %1426  ;;  %v1393_v22 = vunpack.i.l.bf16 %v1785_v16 }
 0x123   : > { %952 = vrot.lane.b32.xlu1 %v1710_v54, %s1554_s26  ;;  %1145 = vperm.xlu0 %1377, %v1142_v21   ;;  %v1394_v21 = vunpack.i.h.bf16 %v1785_v16 }
 0x124   : > { %962 = vrot.lane.b32.xlu2 %v1710_v54, %s1562_s28 }
 0x125   : > { %v1407_v23 = vpop.permute.xlu0 %1406  ;;  %v1797_v24 = vpop.permute.xlu1 %1401 }
 0x126   : > { %v1799_v25 = vpop.permute.xlu2 %1441  ;;  %v1409_v39 = vunpack.i.h.bf16 %v1407_v23  ;;  %v1408_v40 = vunpack.i.l.bf16 %v1407_v23  ;;  %v1404_v53 = vunpack.i.h.bf16 %v1797_v24  ;;  %v1403_v55 = vunpack.i.l.bf16 %v1797_v24 }
 0x127   : > { %v1443_v58 = vunpack.i.l.bf16 %v1799_v25  ;;  %v648_v24 = vsel %vm2193_vm3, %v1414_v43, %v1745_v3  ;;  %v1388_v43 = vunpack.i.l.bf16 %v1787_v18  ;;  %vm1909_vm3 = vmpackc.low %vm2199_vm5, %vm1564_vm11  ;;  %vm912_vm11 = vcmask 1031168  }
 0x128   : > { %v634_v57 = vsel %vm2194_vm6, %v1408_v40, %v1409_v39  ;;  %v635_v63 = vsel %vm2194_vm6, %v1409_v39, %v1763_v9  ;;  %vm1242_vm6 = vmpackc.low %vm2197_vm8, %vm2196_vm4 }
 0x129   : > { %v1237_v23 = vpack.c.bf16 %v647_v15, %v634_v57  ;;  %v622_v40 = vsel %vm2202_vm10, %v1404_v53, %v1443_v58 }
 0x12b   : > { %755 = vrot.lane.b32.xlu1 %v1539_v17, %s1563_s27 }
 0x12c   : > { %932 = vrot.lane.b32.xlu2 %v1710_v54, %s1543_s24 }
 0x12d   : > { %v1417_v30 = vpop.permute.xlu1 %1416  ;;  %v1814_v31 = vpop.permute.xlu0 %1421 }
 0x12e   : > { %v1419_v32 = vunpack.i.h.bf16 %v1417_v30  ;;  %v1418_v33 = vunpack.i.l.bf16 %v1417_v30  ;;  %v1816_v34 = vpop.permute.xlu2 %1446  ;;  %v1424_v11 = vunpack.i.h.bf16 %v1814_v31 }
 0x12f   : > { %v1449_v35 = vunpack.i.h.bf16 %v1816_v34  ;;  %v1448_v17 = vunpack.i.l.bf16 %v1816_v34 }
 0x130   : > { %v660_v42 = vsel %vm2192_vm2, %v1418_v33, %v1419_v32  ;;  %v621_v33 = vsel %vm2202_vm10, %v1403_v55, %v1404_v53  ;;  %v1253_v53 = vpack.c.bf16 %v622_v40, %v1704_v44  ;;  %v1925_v55 = vadd.s32 2, %v1803_v27 }
 0x131   : > { %v664_v46 = vsel %vm2196_vm4, %v660_v42, 0.0  ;;  %v661_v47 = vsel %vm2192_vm2, %v1419_v32, %v1448_v17  ;;  %v1845_v51 = vsel %vm2192_vm2, %v1449_v35, %v1448_v17  ;;  %v1250_v32 = vpack.c.bf16 %v648_v24, %v635_v63 }
 0x132   : > { %v674_v49 = vpack.c.bf16 %v664_v46, %v664_v46  ;;  %v665_v50 = vsel %vm2199_vm5, %v661_v47, 0.0  ;;  %v1389_v42 = vunpack.i.h.bf16 %v1787_v18  ;;  %vm2201_vm2 = vcmask 130048  }
 0x133   : > { %1137 = vperm.xlu1 %1378, %v1134_v41   ;;  %v675_v52 = vpack.c.bf16 %v665_v50, %v665_v50  ;;  %v1384_v41 = vunpack.i.h.bf16 %v1761_v8  ;;  %v1383_v46 = vunpack.i.l.bf16 %v1761_v8  ;;  %v1240_v47 = vpack.c.bf16 %v621_v33, %v1697_v38 }
 0x134   : > { %725 = vperm.xlu2 %1379, %v722_v45   ;;  %v683_v56 = vsel %vm2198_vm7, %v674_v49, 0  ;;  %v593_v49 = vsel %vm2195_vm14, %v1393_v22, %v1394_v21  ;;  %v606_v50 = vsel %vm605_vm15, %v1398_v1, %v1399_v0  ;;  %v1922_v38 = vadd.s32 4294967294, %v1803_v27 }
 0x135   : > { %691 = vmatpush.bf16.msra.mxu2 %v683_v56  ;;  %v1854_v59 = vpop.permute.xlu1 %1431  ;;  %v686_v60 = vsel %vm2198_vm7, %v675_v52, 0  ;;  %v1857_v61 = vpop.permute.xlu0 %1436  ;;  %v1428_v52 = vunpack.i.l.bf16 %v1789_v19  ;;  %v1423_v56 = vunpack.i.l.bf16 %v1814_v31  ;;  %v1243_v27 = vpack.c.bf16 %v606_v50, %v593_v49 }
 0x136   : > { %v1863_v14 = vpop.permute.xlu2 %1456  ;;  %704 = vmatpush.bf16.msra.mxu3 %v686_v60  ;;  %v1433_v17 = vunpack.i.l.bf16 %v1854_v59  ;;  %v1438_v39 = vunpack.i.l.bf16 %v1857_v61  ;;  %v1950_v33 = vadd.s32 4294967294, %v1801_v26  ;;  %vm925_vm4 = vcmask 932864  }
 0x137   : > { %vm735_vm8 = vcmp.ge.s32.totalorder %v1922_v38, 0  ;;  %vm799_vm7 = vcmp.lt.s32.totalorder %v1925_v55, 16  ;;  %v1444_v40 = vunpack.i.h.bf16 %v1799_v25  ;;  %v573_v50 = vsel %vm2201_vm2, %v1389_v42, %v1428_v52 }
 0x138   : > { %v594_v63 = vsel %vm2195_vm14, %v1394_v21, %v1433_v17  ;;  %v607_v15 = vsel %vm605_vm15, %v1399_v0, %v1438_v39  ;;  %v1459_v21 = vunpack.i.h.bf16 %v1863_v14  ;;  %v1458_v0 = vunpack.i.l.bf16 %v1863_v14  ;;  %vm1255_vm14 = vmpackc.low %vm538_vm9, %vm2199_vm5 }
 0x139   : > { %1238 = vmatpush.bf16.msk.msra.mxu2 %vm1869_vm12, %v1237_v23  ;;  %v1953_v17 = vadd.s32 2, %v1801_v26  ;;  %v1256_v39 = vpack.c.bf16 %v607_v15, %v594_v63  ;;  %v553_v14 = vsel %vm2200_vm0, %v1383_v46, %v1384_v41  ;;  %vm1969_vm5 = vmpackc.low %vm735_vm8, %vm799_vm7  ;;  %v676_v63 = vld [vmem:[%s2185_s4] sm:$0xf]  ;;  %v901_v15 = vsel %vm2202_vm10, %v1444_v40, %v1443_v58 }
 0x13a   : > { %1251 = vmatpush.bf16.msk.msra.mxu3 %vm1880_vm13, %v1250_v32  ;;  %v572_v32 = vsel %vm2201_vm2, %v1388_v43, %v1389_v42  ;;  %vm2204_vm2 = vcmask 769024  }
 0x13b   : > { %v1246_v26 = vpack.c.bf16 %v572_v32, %v553_v14 }
 0x13d   : > { %1241 = vmatpush.bf16.msk.msra.mxu2 %vm1900_vm1, %v1240_v47  ;;  %v1452_v57 = vpop.permute.xlu1 %1451  ;;  %v907_v60 = vpop.permute.xlu0 %906  ;;  %v554_v47 = vsel %vm2200_vm0, %v1384_v41, %v1423_v56  ;;  %vm798_vm0 = vcmp.lt.s32.totalorder %v1953_v17, 16 }
 0x13e   : > { %v1454_v23 = vunpack.i.h.bf16 %v1452_v57  ;;  %v1453_v44 = vunpack.i.l.bf16 %v1452_v57  ;;  %v1932_v24 = vpop.permute.xlu2 %1461  ;;  %1254 = vmatpush.bf16.msk.msra.mxu3 %vm1909_vm3, %v1253_v53  ;;  %v927_v53 = vsel %vm925_vm4, %v1458_v0, %v1459_v21  ;;  %v1259_v41 = vpack.c.bf16 %v573_v50, %v554_v47 }
 0x13f   : > { %v1463_v58 = vunpack.i.l.bf16 %v1932_v24 }
 0x140   : > { %v914_v49 = vsel %vm912_vm11, %v1453_v44, %v1454_v23  ;;  %v1439_v23 = vunpack.i.h.bf16 %v1857_v61  ;;  %v913_v32 = vsel %vm912_vm11, %v907_v60, %v1453_v44  ;;  %vm2022_vm11 = vmpackc.low %vm538_vm9, %vm735_vm8  ;;  %vm864_vm9 = vcmask 113664  }
 0x141   : > { %1244 = vmatpush.bf16.msk.msra.mxu2 %vm1242_vm6, %v1243_v27  ;;  %vm734_vm6 = vcmp.ge.s32.totalorder %v1950_v33, 0  ;;  %v1300_v56 = vpack.c.bf16 %v927_v53, %v914_v49  ;;  %v1464_v27 = vunpack.i.h.bf16 %v1932_v24  ;;  %v1429_v33 = vunpack.i.h.bf16 %v1789_v19 }
 0x142   : > { %1257 = vmatpush.bf16.msk.msra.mxu3 %vm1255_vm14, %v1256_v39  ;;  %vm2203_vm14 = vcmask 588800   ;;  %vm1997_vm10 = vmpackc.low %vm734_vm6, %vm798_vm0 }
 0x145   : > { %1247 = vmatpush.bf16.msk.msra.mxu2 %vm1869_vm12, %v1246_v26  ;;  %v920_v42 = vpop.permute.xlu1 %919  ;;  %v887_v52 = vpop.permute.xlu0 %886 }
 0x146   : > { %v926_v21 = vsel %vm925_vm4, %v920_v42, %v1458_v0  ;;  %v1987_v39 = vpop.permute.xlu2 %1466  ;;  %1260 = vmatpush.bf16.msk.msra.mxu3 %vm1880_vm13, %v1259_v41  ;;  %vm877_vm4 = vcmask 15360   ;;  %v1303_v0 = vpack.c.bf16 %v901_v15, %v1721_v62  ;;  %v889_v14 = vsel %vm605_vm15, %v1439_v23, %v887_v52 }
 0x147   : > { %v1263_v61 = vpack.c.bf16 %v926_v21, %v913_v32  ;;  %v1469_v60 = vunpack.i.h.bf16 %v1987_v39  ;;  %v1468_v44 = vunpack.i.l.bf16 %v1987_v39  ;;  %v879_v49 = vsel %vm877_vm4, %v1463_v58, %v1464_v27 }
 0x148   : > { %1248 = vmatmul.msk.bf16.vlgmr.msra.gmra.mxu2 %vm2203_vm14, %v676_v63  ;;  %v1306_v50 = vpack.c.bf16 %v889_v14, %v879_v49  ;;  %v878_v37 = vsel %vm877_vm4, %v1741_v2, %v1463_v58 }
 0x149   : > { %1301 = vmatpush.bf16.msk.msrb.mxu2 %vm1969_vm5, %v1300_v56  ;;  %1261 = vmatmul.msk.bf16.vlgmr.msra.gmra.mxu3 %vm2203_vm14, %v676_v63  ;;  %v1035_v24 = vsel %vm2204_vm2, %v1468_v44, %v1469_v60  ;;  %vm2223_vm14 = vcmask 1043456   ;;  %vm2224_vm2 = vcmask 1039360   ;;  %v888_v63 = vsel %vm605_vm15, %v1398_v1, %v1439_v23 }
 0x14a   : > { %1264 = vmatpush.bf16.msk.msrb.mxu0 %vm1997_vm10, %v1263_v61  ;;  %v1039_v47 = vsel %vm799_vm7, %v1035_v24, 0.0  ;;  %v1269_v15 = vpack.c.bf16 %v888_v63, %v878_v37  ;;  %vm2228_vm15 = vcmp.lt.s32.totalorder %v1806_v28, 16 }
 0x14b   : > { %v1065_v62 = vpack.c.bf16 %v1039_v47, %v1039_v47 }
 0x14d   : > { %1304 = vmatpush.bf16.msk.msrb.mxu2 %vm1909_vm3, %v1303_v0  ;;  %v897_v53 = vpop.permute.xlu1 %896  ;;  %v851_v41 = vpop.permute.xlu0 %850  ;;  %v1080_v56 = vsel %vm2223_vm14, %v1065_v62, 0  ;;  %vm2231_vm14 = vcmask 121856  }
 0x14e   : > { %v900_v42 = vsel %vm2224_vm2, %v897_v53, %v1444_v40  ;;  %v2028_v52 = vpop.permute.xlu2 %1476  ;;  %1124 = vmatpush.bf16.msrb.mxu3 %v1080_v56  ;;  %vm2225_vm2 = vcmp.ge.s32.totalorder %v1823_v36, 0  ;;  %v2226_v40 = vmov 0  ;;  %vm2232_vm4 = vmmov %vm2231_vm14 }
 0x14f   : > { %v1266_v38 = vpack.c.bf16 %v900_v42, %v1710_v54  ;;  %vm2044_vm8 = vmpackc.low %vm2225_vm2, %vm734_vm6  ;;  %v1434_v54 = vunpack.i.h.bf16 %v1854_v59  ;;  %vm2233_vm2 = vcmp.lt.s32.totalorder %v1809_v29, 16  ;;  %v1478_v16 = vunpack.i.l.bf16 %v2028_v52 }
 0x150   : > { %v2227_v40 = vsel %vm2044_vm8, 4294967295, %v2226_v40  ;;  %vm2057_vm6 = vmpackc.low %vm798_vm0, %vm2228_vm15  ;;  %vm2236_vm15 = vcmask 138240  }
 0x151   : > { %1307 = vmatpush.bf16.msk.msrb.mxu2 %vm2022_vm11, %v1306_v50  ;;  %1267 = vmatpush.bf16.msk.msrb.mxu0 %vm1900_vm1, %v1266_v38  ;;  %v853_v59 = vsel %vm2231_vm14, %v1434_v54, %v851_v41  ;;  %v852_v31 = vsel %vm2232_vm4, %v1393_v22, %v1434_v54  ;;  %v832_v60 = vsel %vm2236_vm15, %v1383_v46, %v1424_v11  ;;  %vm2207_vm14 = vcmask 777216   ;;  %vm2238_vm4 = vmmov %vm2236_vm15 }
 0x152   : > { %vm2240_vm15 = vcmask 769024  }
 0x155   : > { %v1472_v27 = vpop.permute.xlu1 %1471  ;;  %v831_v2 = vpop.permute.xlu0 %830  ;;  %1270 = vmatpush.bf16.msk.msrb.mxu0 %vm2044_vm8, %v1269_v15  ;;  %vm2072_vm8 = vmpackc.low %vm799_vm7, %vm2233_vm2  ;;  %vm2237_vm7 = vcmask 130048  }
 0x156   : > { %v1474_v1 = vunpack.i.h.bf16 %v1472_v27  ;;  %v1473_v23 = vunpack.i.l.bf16 %v1472_v27  ;;  %v2062_v32 = vpop.permute.xlu2 %1496  ;;  %v842_v29 = vsel %vm2237_vm7, %v1388_v43, %v1429_v33  ;;  %v833_v8 = vsel %vm2238_vm4, %v1424_v11, %v831_v2  ;;  %vm2239_vm2 = vmmov %vm2237_vm7 }
 0x157   : > { %v1275_v0 = vpack.c.bf16 %v842_v29, %v832_v60  ;;  %vm2241_vm7 = vcmask 1043456   ;;  %v1499_v38 = vunpack.i.h.bf16 %v2062_v32  ;;  %v1498_v37 = vunpack.i.l.bf16 %v2062_v32 }
 0x158   : > { %v865_v21 = vsel %vm864_vm9, %v1747_v4, %v1473_v23  ;;  %v866_v58 = vsel %vm864_vm9, %v1473_v23, %v1474_v1  ;;  %v1479_v4 = vunpack.i.h.bf16 %v2028_v52  ;;  %vm2208_vm9 = vcmask 785408  }
 0x159   : > { %v1272_v28 = vpack.c.bf16 %v865_v21, %v852_v31  ;;  %v1309_v61 = vpack.c.bf16 %v866_v58, %v853_v59  ;;  %vm981_vm4 = vcmask 801792  }
 0x15a   : > { %v1009_v49 = vsel %vm2208_vm9, %v1478_v16, %v1479_v4  ;;  %vm968_vm9 = vcmask 900096   ;;  %v983_v59 = vsel %vm981_vm4, %v1498_v37, %v1499_v38 }
 0x15b   : > { %1273 = vmatpush.bf16.msk.msrb.mxu0 %vm2057_vm6, %v1272_v28  ;;  %1310 = vmatpush.bf16.msk.msrb.mxu2 %vm2072_vm8, %v1309_v61 }
 0x15d   : > { %v841_v22 = vpop.permute.xlu1 %840  ;;  %v1482_v55 = vpop.permute.xlu0 %1481 }
 0x15e   : > { %v843_v46 = vsel %vm2239_vm2, %v1429_v33, %v841_v22  ;;  %v1484_v14 = vunpack.i.h.bf16 %v1482_v55  ;;  %v1483_v24 = vunpack.i.l.bf16 %v1482_v55  ;;  %v1015_v62 = vpop.permute.xlu2 %1014  ;;  %vm808_vm2 = vcmask 244736  }
 0x15f   : > { %v1312_v47 = vpack.c.bf16 %v843_v46, %v833_v8  ;;  %1276 = vmatpush.bf16.msk.msrb.mxu0 %vm1869_vm12, %v1275_v0 }
 0x160   : > { %v1022_v18 = vsel %vm2207_vm14, %v1483_v24, %v1484_v14  ;;  %vm994_vm14 = vcmask 793600  }
 0x161   : > { %1313 = vmatpush.bf16.msk.msrb.mxu2 %vm1880_vm13, %v1312_v47  ;;  %v1324_v43 = vpack.c.bf16 %v1022_v18, %v1009_v49 }
 0x163   : > { %1325 = vmatpush.bf16.msk.msrb.mxu3 %vm1909_vm3, %v1324_v43 }
 0x165   : > { %v1028_v50 = vpop.permute.xlu1 %1027  ;;  %v1487_v53 = vpop.permute.xlu0 %1486 }
 0x166   : > { %v1034_v41 = vsel %vm2240_vm15, %v1028_v50, %v1468_v44  ;;  %v1488_v63 = vunpack.i.l.bf16 %v1487_v53  ;;  %v2106_v15 = vpop.permute.xlu2 %1516  ;;  %v1489_v54 = vunpack.i.h.bf16 %v1487_v53  ;;  %vm821_vm15 = vcmask 146432  }
 0x167   : > { %v1038_v56 = vsel %vm798_vm0, %v1034_v41, 0.0  ;;  %v1519_v1 = vunpack.i.h.bf16 %v2106_v15  ;;  %v1518_v23 = vunpack.i.l.bf16 %v2106_v15  ;;  %vm2242_vm0 = vcmask 785408  }
 0x168   : > { %v1064_v42 = vpack.c.bf16 %v1038_v56, %v1038_v56  ;;  %v809_v33 = vsel %vm808_vm2, %v1756_v7, %v1488_v63  ;;  %v810_v31 = vsel %vm808_vm2, %v1488_v63, %v1489_v54  ;;  %vm2247_vm2 = vcmask 588800  }
 0x169   : > { %v970_v7 = vsel %vm968_vm9, %v1518_v23, %v1519_v1 }
 0x16a   : > { %v1077_v52 = vsel %vm2241_vm7, %v1064_v42, 0  ;;  %vm2243_vm7 = vcmask 777216   ;;  %v1330_v55 = vpack.c.bf16 %v970_v7, %v1845_v51 }
 0x16b   : > { %1098 = vmatpush.bf16.msrb.mxu1 %v1077_v52  ;;  %v1021_v22 = vsel %vm2243_vm7, %v1015_v62, %v1483_v24 }
 0x16d   : > { %v1492_v39 = vpop.permute.xlu1 %1491  ;;  %v1502_v27 = vpop.permute.xlu0 %1501 }
 0x16e   : > { %v1494_v17 = vunpack.i.h.bf16 %v1492_v39  ;;  %v1493_v44 = vunpack.i.l.bf16 %v1492_v39  ;;  %v1504_v2 = vunpack.i.h.bf16 %v1502_v27  ;;  %v1503_v11 = vunpack.i.l.bf16 %v1502_v27  ;;  %v976_v25 = vpop.permute.xlu2 %975 }
 0x170   : > { %v822_v32 = vsel %vm821_vm15, %v1774_v12, %v1493_v44  ;;  %v823_v21 = vsel %vm821_vm15, %v1493_v44, %v1494_v17  ;;  %v996_v58 = vsel %vm994_vm14, %v1503_v11, %v1504_v2 }
 0x171   : > { %v1278_v28 = vpack.c.bf16 %v822_v32, %v809_v33  ;;  %v1315_v61 = vpack.c.bf16 %v823_v21, %v810_v31  ;;  %v1327_v60 = vpack.c.bf16 %v996_v58, %v983_v59 }
 0x173   : > { %1279 = vmatpush.bf16.msk.msrb.mxu0 %vm1997_vm10, %v1278_v28  ;;  %1316 = vmatpush.bf16.msk.msrb.mxu2 %vm1969_vm5, %v1315_v61  ;;  %vm774_vm5 = vcmask 261120   ;;  %vm787_vm10 = vcmask 252928  }
 0x174   : > { %1328 = vmatpush.bf16.msk.msrb.mxu3 %vm2022_vm11, %v1327_v60 }
 0x175   : > { %v1002_v12 = vpop.permute.xlu1 %1001  ;;  %v1507_v4 = vpop.permute.xlu0 %1506 }
 0x176   : > { %v1008_v29 = vsel %vm2242_vm0, %v1002_v12, %v1478_v16  ;;  %v1509_v57 = vunpack.i.h.bf16 %v1507_v4  ;;  %v1508_v8 = vunpack.i.l.bf16 %v1507_v4  ;;  %v982_v16 = vsel %vm981_vm4, %v976_v25, %v1498_v37  ;;  %v1527_v50 = vpop.permute.xlu2 %1526 }
 0x177   : > { %v1287_v0 = vpack.c.bf16 %v1021_v22, %v1008_v29  ;;  %v1529_v56 = vunpack.i.h.bf16 %v1527_v50  ;;  %vm761_vm4 = vcmask 269312  }
 0x178   : > { %1331 = vmatpush.bf16.msk.msrb.mxu3 %vm2072_vm8, %v1330_v55  ;;  %v775_v18 = vsel %vm774_vm5, %v1754_v6, %v1508_v8  ;;  %v776_v43 = vsel %vm774_vm5, %v1508_v8, %v1509_v57  ;;  %vm2244_vm8 = vnez %v2227_v40  ;;  %v1066_v6 = vld [vmem:[%s2188_s7] sm:$0xff] }
 0x179   : > { %1288 = vmatpush.bf16.msk.msrb.mxu1 %vm1900_vm1, %v1287_v0  ;;  %v1068_v37 = vunpack.c.l.b16 %v1066_v6  ;;  %v1069_v27 = vunpack.c.h.b16 %v1066_v6 }
 0x17b   : > { %v1070_v39 = vpack.c.b16 %v1068_v37, %v1068_v37  ;;  %v1071_v33 = vpack.c.b16 %v1069_v27, %v1069_v27 }
 0x17d   : > { %v1512_v46 = vpop.permute.xlu1 %1511  ;;  %v989_v14 = vpop.permute.xlu0 %988 }
 0x17e   : > { %v1514_v47 = vunpack.i.h.bf16 %v1512_v46  ;;  %v1513_v24 = vunpack.i.l.bf16 %v1512_v46  ;;  %v995_v51 = vsel %vm994_vm14, %v989_v14, %v1503_v11  ;;  %vm748_vm14 = vcmask 277504   ;;  %v963_v17 = vpop.permute.xlu2 %962 }
 0x17f   : > { %v1290_v49 = vpack.c.bf16 %v995_v51, %v982_v16  ;;  %v969_v32 = vsel %vm968_vm9, %v963_v17, %v1518_v23  ;;  %vm2251_vm9 = vmmov %vm2247_vm2 }
 0x180   : > { %v788_v19 = vsel %vm787_vm10, %v1765_v10, %v1513_v24  ;;  %v789_v62 = vsel %vm787_vm10, %v1513_v24, %v1514_v47  ;;  %v1528_v10 = vunpack.i.l.bf16 %v1527_v50 }
 0x181   : > { %1291 = vmatpush.bf16.msk.msrb.mxu1 %vm2244_vm8, %v1290_v49  ;;  %v1281_v53 = vpack.c.bf16 %v788_v19, %v775_v18  ;;  %v1318_v41 = vpack.c.bf16 %v789_v62, %v776_v43 }
 0x182   : > { %v763_v45 = vsel %vm761_vm4, %v1528_v10, %v1529_v56 }
 0x183   : > { %1282 = vmatpush.bf16.msk.msrb.mxu0 %vm1900_vm1, %v1281_v53  ;;  %1319 = vmatpush.bf16.msk.msrb.mxu2 %vm1909_vm3, %v1318_v41  ;;  %vm2245_vm3 = vcmask 924672   ;;  %vm2246_vm1 = vcmask 916480  }
 0x184   : > { %vm2249_vm15 = vmmov %vm2246_vm1 }
 0x185   : > { %v1522_v42 = vpop.permute.xlu1 %1521  ;;  %v935_v48 = vpop.permute.xlu0 %934 }
 0x186   : > { %v1524_v52 = vunpack.i.h.bf16 %v1522_v42  ;;  %v1523_v38 = vunpack.i.l.bf16 %v1522_v42  ;;  %v937_v2 = vsel %vm2245_vm3, %v935_v48, %v1763_v9  ;;  %v933_v31 = vpop.permute.xlu2 %932 }
 0x188   : > { %v750_v63 = vsel %vm748_vm14, %v1523_v38, %v1524_v52  ;;  %v749_v34 = vsel %vm748_vm14, %v1776_v13, %v1523_v38 }
 0x189   : > { %v1321_v54 = vpack.c.bf16 %v763_v45, %v750_v63 }
 0x18b   : > { %1322 = vmatpush.bf16.msk.msrb.mxu2 %vm2022_vm11, %v1321_v54  ;;  %vm2248_vm11 = vcmask 908288  }
 0x18d   : > { %v945_v44 = vpop.permute.xlu1 %944  ;;  %v943_v59 = vpop.permute.xlu0 %942 }
 0x18e   : > { %v947_v11 = vsel %vm2246_vm1, %v945_v44, %v1745_v3  ;;  %1116 = vmatmul.bf16.vlgmr.msrb.gmra.mxu2 %v1070_v39  ;;  %v946_v21 = vsel %vm2249_vm15, %v943_v59, %v945_v44  ;;  %v726_v20 = vpop.permute.xlu2 %725 }
 0x18f   : > { %v1333_v1 = vpack.c.bf16 %v947_v11, %v937_v2 }
 0x191   : > { %1334 = vmatpush.bf16.msk.msrb.mxu3 %vm1880_vm13, %v1333_v1  ;;  %vm2250_vm13 = vmmov %vm2245_vm3 }
 0x192   : > { %v936_v30 = vsel %vm2250_vm13, %v933_v31, %v935_v48 }
 0x193   : > { %v1296_v58 = vpack.c.bf16 %v946_v21, %v936_v30 }
 0x194   : > { %1335 = vmatmul.msk.bf16.vlgmr.msrb.gmra.mxu3 %vm2247_vm2, %v1071_v33 }
 0x195   : > { %v953_v26 = vpop.permute.xlu1 %952  ;;  %v1146_v46 = vpop.permute.xlu0 %1145 }
 0x196   : > { %v956_v9 = vsel %vm2248_vm11, %v953_v26, %v1449_v35 }
 0x197   : > { %v1293_v3 = vpack.c.bf16 %v969_v32, %v956_v9 }
 0x199   : > { %1294 = vmatpush.bf16.msk.msrb.mxu1 %vm2057_vm6, %v1293_v3 }
 0x19d   : > { %v756_v28 = vpop.permute.xlu1 %755  ;;  %1297 = vmatpush.bf16.msk.msrb.mxu1 %vm1869_vm12, %v1296_v58 }
 0x19e   : > { %v762_v35 = vsel %vm761_vm4, %v756_v28, %v1528_v10 }
 0x19f   : > { %v1284_v15 = vpack.c.bf16 %v762_v35, %v749_v34 }
 0x1a0   : > { %1298 = vmatmul.msk.bf16.vlgmr.msrb.gmra.mxu1 %vm2251_vm9, %v1071_v33 }
 0x1a1   : > { %1285 = vmatpush.bf16.msk.msrb.mxu0 %vm2244_vm8, %v1284_v15 }
 0x1a4   : > { %1090 = vmatmul.bf16.vlgmr.msrb.gmra.mxu0 %v1070_v39 }
 0x1a5   : > { %v1138_v0 = vpop.permute.xlu1 %1137 }
 0x1cb   : > { %v697_v36 = vpop.f32.mrf.mxu2 }
 0x1cc   : > { %v720_v23 = vmul.f32 %v1751_v5, %v697_v36  ;;  %v710_v61 = vpop.f32.mrf.mxu3 }
 0x1cd   : > { %v721_v60 = vmul.f32 %v1751_v5, %v710_v61 }
 0x1ce   : > { %v728_v7 = vadd.f32 %v726_v20, %v720_v23 }
 0x1cf   : > { %v729_v12 = vadd.f32 %v726_v20, %v721_v60 }
 0x1d0   : > { %v730_v13 = vmax.f32 %v728_v7, 0.0 }
 0x1d1   : > { %v731_v4 = vmax.f32 %v729_v12, 0.0 }
 0x1d2   : > { %1154 = vst [vmem:[%s1693_s17 + $0x10] sm:$0xff] %v730_v13 }
 0x1d3   : > { %1155 = vst [vmem:[%s1693_s17 + $0x18] sm:$0xff] %v731_v4  ;;  %v699_v29 = vpop.f32.mrf.mxu2 }
 0x1d4   : > { %v712_v22 = vpop.f32.mrf.mxu3 }
 0x211   : > { %v1117_v55 = vpop.f32.mrf.mxu2 }
 0x217   : > { %v1130_v40 = vpop.f32.mrf.mxu3 }
 0x218   : > { %v1131_v25 = vadd.f32 %v1130_v40, %v1117_v55 }
 0x219   : > { %v1119_v57 = vpop.f32.mrf.mxu2 }
 0x21a   : > { %v1141_v8 = vmul.f32 %v1138_v0, %v1131_v25 }
 0x21c   : > { %v1149_v14 = vadd.f32 %v1146_v46, %v1141_v8 }
 0x21d   : > { %v1104_v16 = vpop.f32.mrf.mxu1 }
 0x21e   : > { %v1151_v5 = vmax.f32 %v1149_v14, 0.0 }
 0x21f   : > { %v1132_v47 = vpop.f32.mrf.mxu3 }
 0x220   : > { %1157 = vst [vmem:[%s1693_s17 + $0x28] sm:$0xff] %v1151_v5 }
 0x221   : > { %v1091_v24 = vpop.f32.mrf.mxu0 }
 0x222   : > { %v1105_v51 = vadd.f32 %v1104_v16, %v1091_v24 }
 0x224   : > { %v1140_v49 = vmul.f32 %v1138_v0, %v1105_v51 }
 0x225   : > { %v1106_v18 = vpop.f32.mrf.mxu1 }
 0x226   : > { %v1148_v19 = vadd.f32 %v1146_v46, %v1140_v49 }
 0x228   : > { %v1150_v43 = vmax.f32 %v1148_v19, 0.0 }
 0x229   : > { %v1093_v62 = vpop.f32.mrf.mxu0 }
 0x22a   : > { %1156 = vst [vmem:[%s1693_s17 + $0x20] sm:$0xff] %v1150_v43 }
 0x22b PF: > { %s20_s13 = sadd.s32 1, %s1536_s13  }
 0x22c   : > { %p17_p4 = scmp.ge.s32.totalorder %s20_s13, 4  }
 0x22e   :  { %19 = sbr.rel (!%p17_p4) target bundleno = 1 (0x1), region = 90 }

</bundles_post_ra>
